<compile_context>
chip_gen: v7x
topology: tpu7x:2x2x1
jax: 0.10.0
libtpu: 0.0.40
codegen_flags: <defaults>
</compile_context>

<pallas_src>
import jax
import jax.numpy as jnp
import numpy as np
from jax.experimental import pallas as pl
from jax.experimental.pallas import tpu as pltpu

CNN_DIM = 64           # stands in for resnet152's 2048 (small synthetic size)
EMBED = 32             # out_dim / embed_size
D_H = CNN_DIM // 2     # PIENet hidden dim (cnn_dim // 2)
N_HEAD = 1             # img_num_embeds = 1 (kernel assumes a single head)
T = 49                 # 7 * 7 real spatial tokens
T_PAD = 56             # tokens padded (in VMEM only) to a sublane multiple of 8
LN_EPS = 1e-5          # nn.LayerNorm default eps
L2_EPS = 1e-12         # F.normalize default eps

OUT_W = ((2 * EMBED + T_PAD + 127) // 128) * 128   # fused lane-dense output width (=128)
PAD_W = OUT_W - 2 * EMBED - T_PAD                  # trailing pad lanes (=8)


def pie_image_kernel(x_ref, w1_ref, w2_ref, wcat_ref, vec_ref, out_ref, xpad_ref):
    bb = x_ref.shape[0]

    # --- build the tile-aligned padded token slab in VMEM (no HBM pad pass) ---
    # Pad rows 49..55 are rewritten to zero every step, so this is safe under
    # "parallel" grid sharding (no cross-step / cross-core scratch state).
    xpad_ref[:, :T, :] = x_ref[...]
    xpad_ref[:, T:, :] = jnp.zeros((bb, T_PAD - T, CNN_DIM), jnp.float32)
    xp = xpad_ref[...]                              # (bb, T_PAD, C), pad rows zero
    # T_PAD % 8 == 0 -> this collapse is sublane-tile aligned.
    x2 = xp.reshape(bb * T_PAD, CNN_DIM)            # (bb*T_PAD, C) flat token slab

    # --- MultiHeadSelfAttention (n_head = 1): one big MXU matmul per block ---
    h2 = jnp.tanh(jnp.dot(x2, w1_ref[...], preferred_element_type=jnp.float32))
    h3 = h2.reshape(bb, T_PAD, D_H)                 # aligned expand back per-image
    # w_2 has a single output column: lane reduction instead of a (., 1) matmul.
    logits = jnp.sum(h3 * w2_ref[...], axis=-1)     # (bb, T_PAD), lane-dense

    # masked softmax over the 49 real tokens (softmax dim=1 in the module)
    tok = jax.lax.broadcasted_iota(jnp.int32, (bb, T_PAD), 1)
    valid = tok < T
    lm = jnp.where(valid, logits, jnp.float32(-1e30))
    m = jnp.max(lm, axis=-1, keepdims=True)
    e = jnp.where(valid, jnp.exp(lm - m), 0.0)
    attn = e / jnp.sum(e, axis=-1, keepdims=True)   # (bb, T_PAD), pad lanes exactly 0

    # --- token reductions (VPU/XLU; keep the MXU free) -----------------------
    # pad rows of xp and pad lanes of attn are zero -> both reductions exact.
    pooled = jnp.sum(xp, axis=1) * jnp.float32(1.0 / T)       # avgpool     (bb, C)
    resid_feat = jnp.sum(xp * attn[:, :, None], axis=1)       # bmm(attn^T, x) (bb, C)

    # --- merged epilogue matmul: [pooled; residual] @ [fc_w | pie_fc_w] ------
    lhs = jnp.concatenate([pooled, resid_feat], axis=0)       # (2bb, C), aligned concat
    proj = jnp.dot(lhs, wcat_ref[...], preferred_element_type=jnp.float32)  # (2bb, 2E)

    vec = vec_ref[...]                                        # (4, E) packed params
    b_fc, b_pie, gamma, beta = vec[0:1], vec[1:2], vec[2:3], vec[3:4]
    out_lin = proj[:bb, :EMBED] + b_fc                        # image fc (dropout p=0)
    res = jax.nn.sigmoid(proj[bb:, EMBED:] + b_pie)           # PIENet fc + sigmoid

    # --- layer_norm(out + residual) ------------------------------------------
    y = out_lin + res
    mu = jnp.mean(y, axis=-1, keepdims=True)
    var = jnp.mean((y - mu) ** 2, axis=-1, keepdims=True)
    yn = (y - mu) * jax.lax.rsqrt(var + LN_EPS) * gamma + beta

    # --- F.normalize(p=2, dim=-1): x / max(||x||, eps) == x*rsqrt(max(ss,eps^2))
    out_n = yn * jax.lax.rsqrt(
        jnp.maximum(jnp.sum(yn * yn, axis=-1, keepdims=True), L2_EPS * L2_EPS))
    res_n = res * jax.lax.rsqrt(
        jnp.maximum(jnp.sum(res * res, axis=-1, keepdims=True), L2_EPS * L2_EPS))

    # --- single fused, lane-dense 128-wide store ------------------------------
    pad = jnp.zeros((bb, PAD_W), jnp.float32)
    out_ref[...] = jnp.concatenate([out_n, res_n, attn, pad], axis=-1)   # (bb, 128)


def pie_image_forward(feats, params, *, block_b=512):
    """feats: (B, T=49, CNN_DIM) = resnet 7x7 features, already (b, hw, c)."""
    B = feats.shape[0]
    wfc, bfc, w1, w2, pfw, pfb, g, beta = params

    # Batch block sizing (sweep 256 / 512 / 1024; budget ~55 KiB VMEM per image):
    #   * multiple of 8 (sublane alignment of all per-image slices)
    #   * large enough to amortize the ~0.35 us per-grid-step overhead
    #   * split into >=2 grid steps when the batch allows, so v7x's two
    #     TensorCores both get work; on 1-TC chips (v5e/v6e) the extra step
    #     costs only ~0.35 us + one output-DMA round trip.
    def ceil8(n):
        return ((n + 7) // 8) * 8

    b8 = ceil8(B)
    bb = max(8, min(block_b, b8))
    if b8 // bb < 2 and b8 >= 16:
        bb = ceil8((B + 1) // 2)
    n_blk = pl.cdiv(B, bb)
    b_pad = n_blk * bb

    # No token padding in HBM (the kernel pads 49->56 in VMEM).  Pad the batch
    # only when B is not a multiple of the block (usually a no-op).
    x = feats.astype(jnp.float32)
    if b_pad != B:
        x = jnp.pad(x, ((0, b_pad - B), (0, 0), (0, 0)))

    w2_row = w2.reshape(1, D_H)                              # (D_H, 1) -> (1, D_H)
    wcat = jnp.concatenate([wfc, pfw], axis=1)               # (C, 2E) merged epilogue RHS
    vecs = jnp.concatenate([bfc, pfb, g, beta], axis=0)      # (4, E) packed params

    def full(shape):
        return pl.BlockSpec(shape, lambda i, _r=len(shape): (0,) * _r)

    slab = pl.pallas_call(
        pie_image_kernel,
        out_shape=jax.ShapeDtypeStruct((b_pad, OUT_W), jnp.float32),
        grid_spec=pltpu.PrefetchScalarGridSpec(
            num_scalar_prefetch=0,
            grid=(n_blk,),
            in_specs=[
                # (bb, 49, C): 49 and C equal the full array dims -> valid block.
                pl.BlockSpec((bb, T, CNN_DIM), lambda i: (i, 0, 0)),
                full((CNN_DIM, D_H)),        # attention w_1
                full((1, D_H)),              # attention w_2 (row)
                full((CNN_DIM, 2 * EMBED)),  # [image fc weight | pie_net.fc weight]
                full((4, EMBED)),            # [fc bias; pie bias; ln gamma; ln beta]
            ],
            out_specs=pl.BlockSpec((bb, OUT_W), lambda i: (i, 0)),
            scratch_shapes=[pltpu.VMEM((bb, T_PAD, CNN_DIM), jnp.float32)],
        ),
        compiler_params=pltpu.CompilerParams(
            dimension_semantics=("parallel",),
            # Raised above the scoped defaults (16 MiB v5e / 32 MiB v6e,v7x) so
            # bb=512 fits; kept <= v7x's 64 MiB physical VMEM per TensorCore.
            vmem_limit_bytes=64 * 1024 * 1024,
        ),
    )(x, w1, w2_row, wcat, vecs)

    # wrapper-side unpacking back to the module's shapes (tiny)
    out = slab[:B, :EMBED][:, None, :]                        # bt_to_b1t: (B, 1, E)
    residual = slab[:B, EMBED:2 * EMBED][:, None, :]          # stash residual (B, 1, E)
    attn = slab[:B, 2 * EMBED:2 * EMBED + T][:, :, None]      # stash attn (B, T, n_head=1)
    return out, attn, residual


if __name__ == "__main__":
    key = jax.random.PRNGKey(0)
    k_img, k_feat, k1, k2, k3, k4 = jax.random.split(key, 6)
    B = 16  # exercises two batch blocks of 8 (parallel grid steps)

    # NCHW images (module input). The pretrained resnet152 backbone is not
    # implemented as a kernel; its 7x7 output feature map is synthesized.
    images = jax.random.normal(k_img, (B, 3, 32, 32), jnp.float32)
    # TODO(synk): resnet152 backbone has no clean Pallas-kernel equivalent; its
    # output out_7x7 is generated synthetically instead of from `images`.
    out_7x7 = jax.random.normal(k_feat, (B, CNN_DIM, 7, 7), jnp.float32)

    # glue: out_7x7.view(-1, cnn_dim, 49).transpose(1, 2)  ->  (B, 49, cnn_dim)
    feats = out_7x7.reshape(B, CNN_DIM, T).transpose(0, 2, 1)

    def xavier(k, shape):
        fan_in, fan_out = shape
        limit = float(np.sqrt(6.0 / (fan_in + fan_out)))
        return jax.random.uniform(k, shape, jnp.float32, -limit, limit)

    # deterministic, synthetic parameters (xavier-uniform-like, zero biases)
    wfc = xavier(k1, (CNN_DIM, EMBED))
    bfc = jnp.zeros((1, EMBED), jnp.float32)
    w1 = xavier(k2, (CNN_DIM, D_H))
    w2 = xavier(k3, (D_H, N_HEAD))
    pfw = xavier(k4, (CNN_DIM, EMBED))
    pfb = jnp.zeros((1, EMBED), jnp.float32)
    g = jnp.ones((1, EMBED), jnp.float32)
    beta = jnp.zeros((1, EMBED), jnp.float32)
    params = (wfc, bfc, w1, w2, pfw, pfb, g, beta)

    out, attn, residual = pie_image_forward(feats, params)
    jax.block_until_ready(out)

    # pure-JAX reference check
    def ref(f):
        pooled = f.mean(axis=1)                                   # avgpool
        o = pooled @ wfc + bfc                                    # fc
        a = jax.nn.softmax(jnp.tanh(f @ w1) @ w2, axis=1)         # attention
        r = jnp.einsum('bth,btc->bhc', a, f)[:, 0]                # bmm + squeeze
        r = jax.nn.sigmoid(r @ pfw + pfb)                         # pie fc
        y = o + r
        mu = y.mean(-1, keepdims=True)
        var = ((y - mu) ** 2).mean(-1, keepdims=True)
        yn = (y - mu) / jnp.sqrt(var + LN_EPS) * g + beta         # layer norm
        on = yn / jnp.maximum(jnp.linalg.norm(yn, axis=-1, keepdims=True), L2_EPS)
        rn = r / jnp.maximum(jnp.linalg.norm(r, axis=-1, keepdims=True), L2_EPS)
        return on[:, None, :], a, rn[:, None, :]

    ro, ra, rr = ref(feats)
    assert np.allclose(np.asarray(out), np.asarray(ro), atol=1e-4)
    assert np.allclose(np.asarray(attn), np.asarray(ra), atol=1e-4)
    assert np.allclose(np.asarray(residual), np.asarray(rr), atol=1e-4)

    print("KERNEL_OK")
</pallas_src>

<mosaic_0001>
module attributes {stable_mosaic.version = 11 : i64} {
  func.func @pie_image_kernel(%arg0: i32, %arg1: memref<8x49x64xf32, #tpu.memory_space<vmem>>, %arg2: memref<64x32xf32, #tpu.memory_space<vmem>>, %arg3: memref<1x32xf32, #tpu.memory_space<vmem>>, %arg4: memref<64x64xf32, #tpu.memory_space<vmem>>, %arg5: memref<4x32xf32, #tpu.memory_space<vmem>>, %arg6: memref<8x128xf32, #tpu.memory_space<vmem>>, %arg7: memref<8x56x64xf32, #tpu.memory_space<vmem>>) attributes {dimension_semantics = [#tpu.dimension_semantics<parallel>], iteration_bounds = array<i64: 2>, scalar_prefetch = 0 : i64, scratch_operands = 1 : i64, tpu.core_type = #tpu.core_type<tc>, window_params = [{transform_indices = @transform_0, window_bounds = array<i64: 8, 49, 64>}, {pipeline_mode = #tpu.pipeline_mode<synchronous>, transform_indices = @transform_1, window_bounds = array<i64: 64, 32>}, {pipeline_mode = #tpu.pipeline_mode<synchronous>, transform_indices = @transform_2, window_bounds = array<i64: 1, 32>}, {pipeline_mode = #tpu.pipeline_mode<synchronous>, transform_indices = @transform_3, window_bounds = array<i64: 64, 64>}, {pipeline_mode = #tpu.pipeline_mode<synchronous>, transform_indices = @transform_4, window_bounds = array<i64: 4, 32>}, {transform_indices = @transform_5, window_bounds = array<i64: 8, 128>}]} {
    %c0 = arith.constant 0 : index
    %c0_0 = arith.constant 0 : index
    %c0_1 = arith.constant 0 : index
    %0 = vector.load %arg1[%c0, %c0_0, %c0_1] : memref<8x49x64xf32, #tpu.memory_space<vmem>>, vector<8x49x64xf32>
    %c0_2 = arith.constant 0 : index
    %c0_3 = arith.constant 0 : index
    %c0_4 = arith.constant 0 : index
    %1 = vector.load %arg7[%c0_2, %c0_3, %c0_4] : memref<8x56x64xf32, #tpu.memory_space<vmem>>, vector<8x49x64xf32>
    tpu.vector_store %arg7[%c0_2, %c0_3, %c0_4], %0 {strides = array<i32>} : memref<8x56x64xf32, #tpu.memory_space<vmem>>, vector<8x49x64xf32>,
    %cst = arith.constant 0.000000e+00 : f32
    %2 = vector.broadcast %cst : f32 to vector<8x7x64xf32>
    %c0_5 = arith.constant 0 : index
    %c49 = arith.constant 49 : index
    %c0_6 = arith.constant 0 : index
    %3 = vector.load %arg7[%c0_5, %c49, %c0_6] : memref<8x56x64xf32, #tpu.memory_space<vmem>>, vector<8x7x64xf32>
    tpu.vector_store %arg7[%c0_5, %c49, %c0_6], %2 {strides = array<i32>} : memref<8x56x64xf32, #tpu.memory_space<vmem>>, vector<8x7x64xf32>,
    %c0_7 = arith.constant 0 : index
    %c0_8 = arith.constant 0 : index
    %c0_9 = arith.constant 0 : index
    %4 = vector.load %arg7[%c0_7, %c0_8, %c0_9] : memref<8x56x64xf32, #tpu.memory_space<vmem>>, vector<8x56x64xf32>
    %5 = vector.shape_cast %4 : vector<8x56x64xf32> to vector<448x64xf32>
    %c0_10 = arith.constant 0 : index
    %c0_11 = arith.constant 0 : index
    %6 = vector.load %arg2[%c0_10, %c0_11] : memref<64x32xf32, #tpu.memory_space<vmem>>, vector<64x32xf32>
    %cst_12 = arith.constant dense<0.000000e+00> : vector<448x32xf32>
    %7 = tpu.matmul %5, %6, %cst_12 {dimension_numbers = #tpu.dot_dimension_numbers<[1], [0], [0], [1], [0, 0, 1, 1], [], []>} : vector<448x64xf32>, vector<64x32xf32>, vector<448x32xf32> -> vector<448x32xf32>
    %8 = math.tanh %7 : vector<448x32xf32>
    %9 = vector.shape_cast %8 : vector<448x32xf32> to vector<8x56x32xf32>
    %c0_13 = arith.constant 0 : index
    %c0_14 = arith.constant 0 : index
    %10 = vector.load %arg3[%c0_13, %c0_14] : memref<1x32xf32, #tpu.memory_space<vmem>>, vector<1x32xf32>
    %11 = vector.shape_cast %10 : vector<1x32xf32> to vector<1x1x32xf32>
    %12 = vector.broadcast %11 : vector<1x1x32xf32> to vector<8x56x32xf32>
    %13 = arith.mulf %9, %12 : vector<8x56x32xf32>
    %cst_15 = arith.constant dense<0.000000e+00> : vector<8x56xf32>
    %14 = vector.multi_reduction <add>, %13, %cst_15 [2] : vector<8x56x32xf32> to vector<8x56xf32>
    %15 = tpu.iota {dimensions = array<i32: 1>} : vector<8x56xi32>
    %c49_i32 = arith.constant 49 : i32
    %16 = vector.broadcast %c49_i32 : i32 to vector<8x56xi32>
    %17 = arith.cmpi slt, %15, %16 : vector<8x56xi32>
    %cst_16 = arith.constant -1.000000e+30 : f32
    %18 = vector.broadcast %cst_16 : f32 to vector<8x56xf32>
    %19 = arith.select %17, %14, %18 : vector<8x56xi1>, vector<8x56xf32>
    %cst_17 = arith.constant dense<0xFF800000> : vector<8xf32>
    %20 = vector.multi_reduction <maximumf>, %19, %cst_17 [1] : vector<8x56xf32> to vector<8xf32>
    %21 = vector.shape_cast %20 : vector<8xf32> to vector<8x1xf32>
    %22 = vector.broadcast %21 : vector<8x1xf32> to vector<8x56xf32>
    %23 = arith.subf %19, %22 : vector<8x56xf32>
    %24 = math.exp %23 : vector<8x56xf32>
    %cst_18 = arith.constant 0.000000e+00 : f32
    %25 = vector.broadcast %cst_18 : f32 to vector<8x56xf32>
    %26 = arith.select %17, %24, %25 : vector<8x56xi1>, vector<8x56xf32>
    %cst_19 = arith.constant dense<0.000000e+00> : vector<8xf32>
    %27 = vector.multi_reduction <add>, %26, %cst_19 [1] : vector<8x56xf32> to vector<8xf32>
    %28 = vector.shape_cast %27 : vector<8xf32> to vector<8x1xf32>
    %29 = vector.broadcast %28 : vector<8x1xf32> to vector<8x56xf32>
    %30 = arith.divf %26, %29 : vector<8x56xf32>
    %cst_20 = arith.constant dense<0.000000e+00> : vector<8x64xf32>
    %31 = vector.multi_reduction <add>, %4, %cst_20 [1] : vector<8x56x64xf32> to vector<8x64xf32>
    %cst_21 = arith.constant 0.0204081628 : f32
    %32 = vector.broadcast %cst_21 : f32 to vector<8x64xf32>
    %33 = arith.mulf %31, %32 : vector<8x64xf32>
    %34 = vector.shape_cast %30 : vector<8x56xf32> to vector<8x56x1xf32>
    %35 = vector.broadcast %34 : vector<8x56x1xf32> to vector<8x56x64xf32>
    %36 = arith.mulf %4, %35 : vector<8x56x64xf32>
    %cst_22 = arith.constant dense<0.000000e+00> : vector<8x64xf32>
    %37 = vector.multi_reduction <add>, %36, %cst_22 [1] : vector<8x56x64xf32> to vector<8x64xf32>
    %38 = tpu.concatenate %33, %37 in 0 : vector<8x64xf32>, vector<8x64xf32> -> vector<16x64xf32>
    %c0_23 = arith.constant 0 : index
    %c0_24 = arith.constant 0 : index
    %39 = vector.load %arg4[%c0_23, %c0_24] : memref<64x64xf32, #tpu.memory_space<vmem>>, vector<64x64xf32>
    %cst_25 = arith.constant dense<0.000000e+00> : vector<16x64xf32>
    %40 = tpu.matmul %38, %39, %cst_25 {dimension_numbers = #tpu.dot_dimension_numbers<[1], [0], [0], [1], [0, 0, 1, 1], [], []>} : vector<16x64xf32>, vector<64x64xf32>, vector<16x64xf32> -> vector<16x64xf32>
    %c0_26 = arith.constant 0 : index
    %c0_27 = arith.constant 0 : index
    %41 = vector.load %arg5[%c0_26, %c0_27] : memref<4x32xf32, #tpu.memory_space<vmem>>, vector<4x32xf32>
    %42 = vector.extract_strided_slice %41 {offsets = [0, 0], sizes = [1, 32], strides = [1, 1]} : vector<4x32xf32> to vector<1x32xf32>
    %43 = vector.extract_strided_slice %41 {offsets = [1, 0], sizes = [1, 32], strides = [1, 1]} : vector<4x32xf32> to vector<1x32xf32>
    %44 = vector.extract_strided_slice %41 {offsets = [2, 0], sizes = [1, 32], strides = [1, 1]} : vector<4x32xf32> to vector<1x32xf32>
    %45 = vector.extract_strided_slice %41 {offsets = [3, 0], sizes = [1, 32], strides = [1, 1]} : vector<4x32xf32> to vector<1x32xf32>
    %46 = vector.extract_strided_slice %40 {offsets = [0, 0], sizes = [8, 32], strides = [1, 1]} : vector<16x64xf32> to vector<8x32xf32>
    %47 = vector.broadcast %42 : vector<1x32xf32> to vector<8x32xf32>
    %48 = arith.addf %46, %47 : vector<8x32xf32>
    %49 = vector.extract_strided_slice %40 {offsets = [8, 32], sizes = [8, 32], strides = [1, 1]} : vector<16x64xf32> to vector<8x32xf32>
    %50 = vector.broadcast %43 : vector<1x32xf32> to vector<8x32xf32>
    %51 = arith.addf %49, %50 : vector<8x32xf32>
    %52 = arith.negf %51 : vector<8x32xf32>
    %53 = math.exp %52 : vector<8x32xf32>
    %cst_28 = arith.constant 1.000000e+00 : f32
    %54 = vector.broadcast %cst_28 : f32 to vector<8x32xf32>
    %55 = arith.addf %54, %53 : vector<8x32xf32>
    %56 = arith.divf %54, %55 : vector<8x32xf32>
    %57 = arith.addf %48, %56 : vector<8x32xf32>
    %cst_29 = arith.constant dense<0.000000e+00> : vector<8xf32>
    %58 = vector.multi_reduction <add>, %57, %cst_29 [1] : vector<8x32xf32> to vector<8xf32>
    %59 = vector.shape_cast %58 : vector<8xf32> to vector<8x1xf32>
    %cst_30 = arith.constant 3.200000e+01 : f32
    %60 = vector.broadcast %cst_30 : f32 to vector<8x1xf32>
    %61 = arith.divf %59, %60 : vector<8x1xf32>
    %62 = vector.broadcast %61 : vector<8x1xf32> to vector<8x32xf32>
    %63 = arith.subf %57, %62 : vector<8x32xf32>
    %64 = arith.mulf %63, %63 : vector<8x32xf32>
    %cst_31 = arith.constant dense<0.000000e+00> : vector<8xf32>
    %65 = vector.multi_reduction <add>, %64, %cst_31 [1] : vector<8x32xf32> to vector<8xf32>
    %66 = vector.shape_cast %65 : vector<8xf32> to vector<8x1xf32>
    %cst_32 = arith.constant 3.200000e+01 : f32
    %67 = vector.broadcast %cst_32 : f32 to vector<8x1xf32>
    %68 = arith.divf %66, %67 : vector<8x1xf32>
    %69 = vector.broadcast %61 : vector<8x1xf32> to vector<8x32xf32>
    %70 = arith.subf %57, %69 : vector<8x32xf32>
    %cst_33 = arith.constant 9.99999974E-6 : f32
    %71 = vector.broadcast %cst_33 : f32 to vector<8x1xf32>
    %72 = arith.addf %68, %71 : vector<8x1xf32>
    %73 = math.rsqrt %72 : vector<8x1xf32>
    %74 = vector.broadcast %73 : vector<8x1xf32> to vector<8x32xf32>
    %75 = arith.mulf %70, %74 : vector<8x32xf32>
    %76 = vector.broadcast %44 : vector<1x32xf32> to vector<8x32xf32>
    %77 = arith.mulf %75, %76 : vector<8x32xf32>
    %78 = vector.broadcast %45 : vector<1x32xf32> to vector<8x32xf32>
    %79 = arith.addf %77, %78 : vector<8x32xf32>
    %80 = arith.mulf %79, %79 : vector<8x32xf32>
    %cst_34 = arith.constant dense<0.000000e+00> : vector<8xf32>
    %81 = vector.multi_reduction <add>, %80, %cst_34 [1] : vector<8x32xf32> to vector<8xf32>
    %82 = vector.shape_cast %81 : vector<8xf32> to vector<8x1xf32>
    %cst_35 = arith.constant 1.000000e-24 : f32
    %83 = vector.broadcast %cst_35 : f32 to vector<8x1xf32>
    %84 = arith.maximumf %82, %83 : vector<8x1xf32>
    %85 = math.rsqrt %84 : vector<8x1xf32>
    %86 = vector.broadcast %85 : vector<8x1xf32> to vector<8x32xf32>
    %87 = arith.mulf %79, %86 : vector<8x32xf32>
    %88 = arith.mulf %56, %56 : vector<8x32xf32>
    %cst_36 = arith.constant dense<0.000000e+00> : vector<8xf32>
    %89 = vector.multi_reduction <add>, %88, %cst_36 [1] : vector<8x32xf32> to vector<8xf32>
    %90 = vector.shape_cast %89 : vector<8xf32> to vector<8x1xf32>
    %cst_37 = arith.constant 1.000000e-24 : f32
    %91 = vector.broadcast %cst_37 : f32 to vector<8x1xf32>
    %92 = arith.maximumf %90, %91 : vector<8x1xf32>
    %93 = math.rsqrt %92 : vector<8x1xf32>
    %94 = vector.broadcast %93 : vector<8x1xf32> to vector<8x32xf32>
    %95 = arith.mulf %56, %94 : vector<8x32xf32>
    %cst_38 = arith.constant 0.000000e+00 : f32
    %96 = vector.broadcast %cst_38 : f32 to vector<8x8xf32>
    %97 = tpu.concatenate %87, %95, %30, %96 in 1 : vector<8x32xf32>, vector<8x32xf32>, vector<8x56xf32>, vector<8x8xf32> -> vector<8x128xf32>
    %c0_39 = arith.constant 0 : index
    %c0_40 = arith.constant 0 : index
    %98 = vector.load %arg6[%c0_39, %c0_40] : memref<8x128xf32, #tpu.memory_space<vmem>>, vector<8x128xf32>
    tpu.vector_store %arg6[%c0_39, %c0_40], %97 {strides = array<i32>} : memref<8x128xf32, #tpu.memory_space<vmem>>, vector<8x128xf32>,
    return
  }
  func.func @transform_0(%arg0: i32) -> (i32, i32, i32) {
    %c0_i32 = arith.constant 0 : i32
    %c0_i32_0 = arith.constant 0 : i32
    %c0_i32_1 = arith.constant 0 : i32
    return %arg0, %c0_i32, %c0_i32_0 : i32, i32, i32
  }
  func.func @transform_1(%arg0: i32) -> (i32, i32) {
    %c0_i32 = arith.constant 0 : i32
    %c0_i32_0 = arith.constant 0 : i32
    %c0_i32_1 = arith.constant 0 : i32
    return %c0_i32, %c0_i32_0 : i32, i32
  }
  func.func @transform_2(%arg0: i32) -> (i32, i32) {
    %c0_i32 = arith.constant 0 : i32
    %c0_i32_0 = arith.constant 0 : i32
    %c0_i32_1 = arith.constant 0 : i32
    return %c0_i32, %c0_i32_0 : i32, i32
  }
  func.func @transform_3(%arg0: i32) -> (i32, i32) {
    %c0_i32 = arith.constant 0 : i32
    %c0_i32_0 = arith.constant 0 : i32
    %c0_i32_1 = arith.constant 0 : i32
    return %c0_i32, %c0_i32_0 : i32, i32
  }
  func.func @transform_4(%arg0: i32) -> (i32, i32) {
    %c0_i32 = arith.constant 0 : i32
    %c0_i32_0 = arith.constant 0 : i32
    %c0_i32_1 = arith.constant 0 : i32
    return %c0_i32, %c0_i32_0 : i32, i32
  }
  func.func @transform_5(%arg0: i32) -> (i32, i32) {
    %c0_i32 = arith.constant 0 : i32
    %c0_i32_0 = arith.constant 0 : i32
    return %arg0, %c0_i32 : i32, i32
  }
}

</mosaic_0001>

<bundles_post_ra>
// kernel: tpu_custom_call.1
= control target key start
LH: loop header
LB: loop body
LE: loop exit
PB: predicated region body
PF: predicated region fallthrough
CT: control target
= control target key end

     0   :  { %10 = vsyncpa [#allocation4], 0  ;;  %s4911_s0 = inlined_call_operand.hbm [shape: f32[16,49,64], index: 0, kind: input, shape index: {}]   ;;  %s4912_s1 = inlined_call_operand.hbm [shape: f32[64,32], index: 1, kind: input, shape index: {}]   ;;  %s4913_s2 = inlined_call_operand.hbm [shape: f32[1,32], index: 2, kind: input, shape index: {}]   ;;  %s4914_s3 = inlined_call_operand.hbm [shape: f32[64,64], index: 3, kind: input, shape index: {}]   ;;  %s4915_s4 = inlined_call_operand.hbm [shape: f32[4,32], index: 4, kind: input, shape index: {}]   ;;  %s4916_s5 = inlined_call_operand.hbm [shape: f32[16,128], index: 5, kind: output, shape index: {}]  }
   0x1   :  { %12 = vsyncpa [#allocation4 + $0x1], 0 }
   0x2   :  { %13 = vsyncpa [#allocation7], 0 }
   0x3   :  { %14 = vsyncpa [#allocation10], 0 }
   0x4   :  { %15 = vsyncpa [#allocation5], 0 }
   0x5   :  { %17 = vsyncpa [#allocation5 + $0x1], 0  ;;  %s3442_s18 = smov 0   ;;  %s3444_s19 = smov 0  }
   0x6   :  { %s3446_s20 = smov 0   ;;  %s3448_s21 = smov 0  }
   0x7 LB: > { %s3463_s22 = sadd.s32 4294967295, %s3398_s21   ;;  %s2591_s23 = sadd.s32 4294967294, %s3398_s21   ;;  %s3398_s21 = sphi %s3448_s21, %s5036_s21   ;;  %s3394_s20 = sphi %s3446_s20, %s5035_s20   ;;  %s3390_s19 = sphi %s3444_s19, %s5034_s19   ;;  %s3386_s18 = sphi %s3442_s18, %s5033_s18  }
   0x8   : > { %p43_p0 = scmp.ne.s32.totalorder %s3390_s19, %s3386_s18  ;;  %p4917_p1 = scmp.eq.s32.totalorder %s3463_s22, 0 }
   0x9   : > { %p157_p3 = scmp.eq.s32.totalorder %s2591_s23, 1  ;;  %p2592_p5 = scmp.ge.s32.totalorder %s3398_s21, 1 }
   0xa   : > { %p3472_p4 = por %p4917_p1, %p43_p0  ;;  %p164_p7 = scmp.lt.s32.totalorder %s3398_s21, 3 }
   0xb   : > { %p3477_p6 = por %p157_p3, %p43_p0  ;;  %s3400_s27 = smov [#allocation6]  }
   0xc   : > { %s4954_s24 = scalar_select %p3472_p4, 1, 0 }
   0xd   : > { %s4955_s25 = scalar_select %p3477_p6, 1, 0 }
   0xe   : > { %p3482_p8 = pnand %p2592_p5, %p164_p7  ;;  %s176_s28 = sshll.u32 %s3400_s27, 4  ;;  %s3486_s28 = int_to_ptr.vmem [resolvable:$true] %s176_s28 }
   0xf   : > { %s3401_s30 = smov [#allocation9]   ;;  %s3402_s7 = smov [#allocation8]  }
  0x10   : > { %s4956_s26 = scalar_select %p3482_p8, 1, 0 }
  0x11   : > { %p2927_p9 = pneg %p3482_p8  ;;  %s200_s6 = sshll.u32 %s3401_s30, 4  ;;  %s3497_s6 = int_to_ptr.vmem [resolvable:$true] %s200_s6 }
  0x12   : > { %s3499_s8 = sshll.u32 %s3402_s7, 4  ;;  %s3182_s11 = scalar_lea.hbm %s4912_s1, 1024  ;;  %s191_s8 = int_to_ptr.vmem [resolvable:$true] %s3499_s8 }
  0x13   : > { %p3493_p11 = pnand %p2927_p9, %p4917_p1  ;;  %p3183_p12 = scmp.ne.s32.totalorder %s4912_s1, %s3182_s11 }
  0x14   : > { %p3189_p5 = scmp.lt.u32.totalorder %s3182_s11, %s4912_s1 }
  0x15   : > { %p3509_p13 = pneg %p3493_p11 }
  0x17   : > { %p3185_p0 = pnand %p3509_p13, %p3183_p12 }
  0x19   : > { %p3186_p3 = pneg %p3185_p0 }
  0x1b   : > { %p3191_p7 = pnand %p3189_p5, %p3186_p3 }
  0x1d   : > { %3194 = shalt.err (!%p3191_p7)
}
  0x1e   : > { %s3195_s17 = scalar_lea.vmem %s3486_s28, 1024  ;;  %p3203_p2 = scmp.lt.s32.totalorder %s3486_s28, %s3486_s28 }
  0x1f   : > { %p3196_p9 = scmp.ne.s32.totalorder %s3486_s28, %s3195_s17  ;;  %p3204_p6 = scmp.lt.s32.totalorder %s3195_s17, %s3195_s17 }
  0x21   : > { %p3198_p10 = pnand %p3196_p9, %p3509_p13  ;;  %p3205_p12 = por %p3204_p6, %p3203_p2 }
  0x23   : > { %p3199_p1 = pneg %p3198_p10 }
  0x25   : > { %p3206_p0 = pnand %p3205_p12, %p3199_p1 }
  0x27   : > { %3209 = shalt.err (!%p3206_p0)
}
  0x28   : > { %s4920_s23 = smov 128   ;;  %s3404_s27 = smov 8  }
  0x29   : > { %2930 = dma.hbm_to_vmem [thread:$0]  (!%p3493_p11), %s4912_s1, 1024, %s3486_s28, [#allocation7], %s4920_s23, %s4920_s23, %s3404_s27  }
  0x2a   : > { %s3210_s11 = scalar_lea.hbm %s4914_s3, 1024 }
  0x2b   : > { %p3211_p1 = scmp.ne.s32.totalorder %s4914_s3, %s3210_s11  ;;  %p3217_p10 = scmp.lt.u32.totalorder %s3210_s11, %s4914_s3 }
  0x2d   : > { %p3213_p2 = pnand %p3211_p1, %p3509_p13 }
  0x2f   : > { %p3214_p6 = pneg %p3213_p2 }
  0x31   : > { %p3219_p3 = pnand %p3217_p10, %p3214_p6 }
  0x33   : > { %3222 = shalt.err (!%p3219_p3)
}
  0x34   : > { %s3223_s28 = scalar_lea.vmem %s3497_s6, 1024  ;;  %p3231_p12 = scmp.lt.s32.totalorder %s3497_s6, %s3497_s6 }
  0x35   : > { %p3224_p5 = scmp.ne.s32.totalorder %s3497_s6, %s3223_s28  ;;  %p3232_p0 = scmp.lt.s32.totalorder %s3223_s28, %s3223_s28 }
  0x37   : > { %p3226_p7 = pnand %p3224_p5, %p3509_p13  ;;  %p3233_p1 = por %p3232_p0, %p3231_p12 }
  0x39   : > { %p3227_p9 = pneg %p3226_p7 }
  0x3b   : > { %p3234_p2 = pnand %p3233_p1, %p3227_p9 }
  0x3d   : > { %3237 = shalt.err (!%p3234_p2)
}
  0x3e   : > { %2936 = dma.hbm_to_vmem [thread:$0]  (!%p3493_p11), %s4914_s3, 1024, %s3497_s6, [#allocation10], %s4920_s23, %s4920_s23, %s3404_s27  }
  0x3f   : > { %s3238_s10 = scalar_lea.hbm %s4913_s2, 16 }
  0x40   : > { %p3239_p6 = scmp.ne.s32.totalorder %s4913_s2, %s3238_s10  ;;  %p3245_p5 = scmp.lt.u32.totalorder %s3238_s10, %s4913_s2 }
  0x42   : > { %p3241_p10 = pnand %p3239_p6, %p3509_p13 }
  0x44   : > { %p3242_p3 = pneg %p3241_p10 }
  0x46   : > { %p3247_p7 = pnand %p3245_p5, %p3242_p3 }
  0x48   : > { %3250 = shalt.err (!%p3247_p7)
}
  0x49   : > { %s3251_s16 = scalar_lea.vmem %s191_s8, 16  ;;  %s3258_s6 = scalar_lea.vmem %s191_s8, 32 }
  0x4a   : > { %p3252_p9 = scmp.ne.s32.totalorder %s191_s8, %s3251_s16  ;;  %p3259_p1 = scmp.lt.s32.totalorder %s191_s8, %s191_s8 }
  0x4b   : > { %p3260_p2 = scmp.lt.s32.totalorder %s3258_s6, %s3251_s16 }
  0x4c   : > { %p3254_p12 = pnand %p3252_p9, %p3509_p13 }
  0x4d   : > { %p3261_p4 = por %p3260_p2, %p3259_p1 }
  0x4e   : > { %p3255_p0 = pneg %p3254_p12 }
  0x50   : > { %p3262_p8 = pnand %p3261_p4, %p3255_p0 }
  0x52   : > { %3265 = shalt.err (!%p3262_p8)
}
  0x53   : > { %2933 = dma.hbm_to_vmem [thread:$0]  (!%p3493_p11), %s4913_s2, 16, %s191_s8, [#allocation7]  }
  0x54   : > { %s3405_s30 = smov [#allocation11]   ;;  %s3266_s11 = scalar_lea.hbm %s4915_s4, 64 }
  0x55   : > { %s214_s7 = sshll.u32 %s3405_s30, 4  ;;  %p3267_p6 = scmp.ne.s32.totalorder %s4915_s4, %s3266_s11  ;;  %s215_s7 = int_to_ptr.vmem [resolvable:$true] %s214_s7 }
  0x56   : > { %p3273_p10 = scmp.lt.u32.totalorder %s3266_s11, %s4915_s4 }
  0x57   : > { %p3269_p4 = pnand %p3267_p6, %p3509_p13 }
  0x59   : > { %p3270_p8 = pneg %p3269_p4 }
  0x5b   : > { %p3275_p3 = pnand %p3273_p10, %p3270_p8 }
  0x5d   : > { %3278 = shalt.err (!%p3275_p3)
}
  0x5e   : > { %s3279_s8 = scalar_lea.vmem %s215_s7, 64  ;;  %p3287_p12 = scmp.lt.s32.totalorder %s215_s7, %s215_s7 }
  0x5f   : > { %p3280_p5 = scmp.ne.s32.totalorder %s215_s7, %s3279_s8  ;;  %p3288_p0 = scmp.lt.s32.totalorder %s3279_s8, %s3279_s8 }
  0x61   : > { %p3282_p7 = pnand %p3280_p5, %p3509_p13  ;;  %p3289_p1 = por %p3288_p0, %p3287_p12 }
  0x63   : > { %p3283_p9 = pneg %p3282_p7 }
  0x65   : > { %p3290_p2 = pnand %p3289_p1, %p3283_p9 }
  0x67   : > { %3293 = shalt.err (!%p3290_p2)
}
  0x68   : > { %2939 = dma.hbm_to_vmem [thread:$0]  (!%p3493_p11), %s4915_s4, 64, %s215_s7, [#allocation10]  }
  0x69   : > { %s3597_s14 = sadd.s32 1, %s3398_s21   ;;  %s30_s17 = sadd.s32 1, %s3394_s20 }
  0x6a   : > { %s27_s29 = ssub.s32 %s3398_s21, %s3597_s14  ;;  %p37_p13 = scmp.ne.s32.totalorder %s3394_s20, %s3390_s19 }
  0x6b   : > { %p28_p6 = scmp.eq.s32.totalorder %s27_s29, 0  ;;  %p38_p4 = scmp.eq.s32.totalorder %s3398_s21, 0 }
  0x6c   : > { %p4959_p8 = scmp.eq.s32.totalorder %s3463_s22, 1  ;;  %p2952_p3 = scmp.lt.s32.totalorder %s3398_s21, 2 }
  0x6d   : > { %s3613_s9 = scalar_select %p28_p6, %s3394_s20, %s30_s17  }
  0x6e   : > { %p3607_p10 = por %p4959_p8, %p37_p13  ;;  %p39_p5 = por %p38_p4, %p37_p13 }
  0x6f   : > { %s225_s10 = sand.u32 1, %s3394_s20   ;;  %s2905_s7 = smul.u32 7168, %s3398_s21 }
  0x70   : > { %s2904_s11 = smul.u32 448, %s225_s10  ;;  %p3617_p11 = pnand %p2952_p3, %p39_p5 }
  0x71   : > { %s3624_s16 = scalar_lea.hbm %s4911_s0, %s2905_s7  ;;  %s3628_s28 = scalar_lea.sflag [#allocation4], %s225_s10 }
  0x72   : > { %s229_s8 = scalar_lea.vmem [#allocation3], %s2904_s11  ;;  %s3294_s17 = scalar_lea.hbm %s3624_s16, 7168 }
  0x73   : > { %s237_s6 = sshll.u32 %s229_s8, 4  ;;  %p3295_p7 = scmp.ne.s32.totalorder %s3624_s16, %s3294_s17  ;;  %s3626_s6 = int_to_ptr.vmem [resolvable:$true] %s237_s6 }
  0x74   : > { %p3296_p9 = pneg %p3617_p11  ;;  %s3299_s13 = scalar_lea.hbm %s4911_s0, 14336 }
  0x75   : > { %p3300_p1 = scmp.lt.u32.totalorder %s3624_s16, %s4911_s0  ;;  %p3301_p2 = scmp.lt.u32.totalorder %s3299_s13, %s3294_s17 }
  0x76   : > { %p3297_p12 = pnand %p3296_p9, %p3295_p7  ;;  %p3303_p6 = scmp.lt.u32.totalorder %s3294_s17, %s3624_s16 }
  0x77   : > { %p3302_p13 = por %p3301_p2, %p3300_p1 }
  0x78   : > { %p3298_p0 = pneg %p3297_p12 }
  0x79   : > { %p3304_p4 = por %p3303_p6, %p3302_p13 }
  0x7b   : > { %p3305_p8 = pnand %p3304_p4, %p3298_p0 }
  0x7d   : > { %3308 = shalt.err (!%p3305_p8)
}
  0x7e   : > { %s3309_s10 = scalar_lea.vmem %s3626_s6, 7168  ;;  %s3406_s11 = smov [#allocation3]  }
  0x7f   : > { %p3310_p3 = scmp.ne.s32.totalorder %s3626_s6, %s3309_s10  ;;  %s3314_s8 = sshll.u32 %s3406_s11, 4  ;;  %s3315_s8 = int_to_ptr.vmem [resolvable:$false] %s3314_s8 }
  0x80   : > { %s3316_s23 = scalar_lea.vmem %s3315_s8, 14336  ;;  %p3317_p12 = scmp.lt.s32.totalorder %s3626_s6, %s3315_s8 }
  0x81   : > { %p3312_p5 = pnand %p3310_p3, %p3296_p9  ;;  %p3318_p1 = scmp.lt.s32.totalorder %s3316_s23, %s3309_s10 }
  0x83   : > { %p3313_p7 = pneg %p3312_p5  ;;  %p3319_p2 = por %p3318_p1, %p3317_p12 }
  0x85   : > { %p3320_p13 = pnand %p3319_p2, %p3313_p7 }
  0x87   : > { %3323 = shalt.err (!%p3320_p13)
}
  0x88   : > { %s4962_s17 = smov 128   ;;  %p4963_p9 = scmp.ne.s32.totalorder %s4956_s26, 0 }
  0x89   : > { %2943 = dma.hbm_to_vmem [thread:$0]  (!%p3617_p11), %s3624_s16, 7168, %s3626_s6, %s3628_s28, %s4962_s17, %s4962_s17, %s3404_s27  }
  0x8a   : > { %249 = sbr.rel (%p4963_p9) target bundleno = 2071 (0x817), region = 40 }
  0x91   : > { %s3662_s29 = sand.u32 1, %s3390_s19   ;;  %p4964_p0 = scmp.ne.s32.totalorder %s4954_s24, 0 }
  0x92   : > { %s2906_s7 = smul.u32 448, %s3662_s29  ;;  %s252_s13 = scalar_lea.sflag [#allocation4], %s3662_s29 }
  0x94   : > { %s3666_s15 = scalar_lea.vmem [#allocation3], %s2906_s7 }
  0x95   : > { %3369 = dma.done.wait (%p4964_p0), %s252_s13, 7168  }
  0x96   : > { %3371 = vsyncadd (%p4964_p0), %s252_s13, 4294960128  ;;  %p4965_p11 = scmp.eq.s32.totalorder %s3463_s22, 0 }
  0x98   : > { %3373 = dma.done.wait (%p4965_p11), [#allocation7], 1040   ;;  %p4966_p6 = pmov %p4965_p11 }
  0x9a   : > { %3375 = vsyncadd (%p4966_p6), [#allocation7], 4294966256  ;;  %p4967_p4 = pmov %p4966_p6 }
  0x9c   : > { %3377 = dma.done.wait (%p4967_p4), [#allocation10], 1088   ;;  %p4968_p8 = pmov %p4967_p4 }
  0x9d   : > { %vm413_vm0 = vcmask 522240   ;;  %v3407_v0 = vmov 0.0   ;;  %v478_v1 = vld [vmem:[#allocation6] sm:$0xff]  ;;  %v479_v2 = vld [vmem:[#allocation6 + $0x8] sm:$0xff]  ;;  %v480_v3 = vld [vmem:[#allocation6 + $0x10] sm:$0xff]  ;;  %vm355_vm1 = vcmask 523264  }
  0x9e   : > { %3379 = vsyncadd (%p4968_p8), [#allocation10], 4294966208  ;;  %414 = vst.msk [vmem:[#allocation2 + $0x31] sm:$0x7f] %vm413_vm0, %v3407_v0  ;;  %v2864_v4 = vpack.c.bf16 %v479_v2, %v478_v1  ;;  %v481_v5 = vld [vmem:[#allocation6 + $0x18] sm:$0xff]  ;;  %v482_v7 = vld [vmem:[#allocation6 + $0x20] sm:$0xff] }
  0x9f   : > { %415 = vst.msk [vmem:[#allocation2 + $0x69] sm:$0x7f] %vm413_vm0, %v3407_v0  ;;  %416 = vst.msk [vmem:[#allocation2 + $0xa1] sm:$0x7f] %vm413_vm0, %v3407_v0  ;;  %v2868_v6 = vpack.c.bf16 %v481_v5, %v480_v3  ;;  %v483_v8 = vld [vmem:[#allocation6 + $0x28] sm:$0xff]  ;;  %v299_v9 = vld [vmem:[%s3666_s15] sm:$0xff] }
  0xa0   : > { %417 = vst.msk [vmem:[#allocation2 + $0xd9] sm:$0x7f] %vm413_vm0, %v3407_v0  ;;  %418 = vst.msk [vmem:[#allocation2 + $0x111] sm:$0x7f] %vm413_vm0, %v3407_v0  ;;  %2865 = vmatprep.subr.bf16.mxu0 %v2864_v4  ;;  %2896 = vmatprep.subr.bf16.mxu1 %v2864_v4  ;;  %v300_v10 = vld [vmem:[%s3666_s15 + $0x8] sm:$0xff]  ;;  %v329_v11 = vld [vmem:[%s3666_s15 + $0xf0] sm:$0xff]  ;;  %v2872_v18 = vpack.c.bf16 %v483_v8, %v482_v7 }
  0xa1   : > { %419 = vst.msk [vmem:[#allocation2 + $0x149] sm:$0x7f] %vm413_vm0, %v3407_v0  ;;  %420 = vst.msk [vmem:[#allocation2 + $0x181] sm:$0x7f] %vm413_vm0, %v3407_v0  ;;  %v330_v12 = vld [vmem:[%s3666_s15 + $0xf8] sm:$0xff]  ;;  %2867 = vmatpush3.bf16.msra.mxu0 %v2864_v4  ;;  %2900 = vmatpush3.bf16.msra.mxu1 %v2864_v4  ;;  %v484_v13 = vld [vmem:[#allocation6 + $0x30] sm:$0xff] }
  0xa2   : > { %421 = vst.msk [vmem:[#allocation2 + $0x1b9] sm:$0x7f] %vm413_vm0, %v3407_v0  ;;  %v485_v14 = vld [vmem:[#allocation6 + $0x38] sm:$0xff]  ;;  %v301_v15 = vld [vmem:[%s3666_s15 + $0x10] sm:$0xff]  ;;  %v303_v17 = vld [vmem:[%s3666_s15 + $0x20] sm:$0xff]  ;;  %vm362_vm2 = vcmask 516096   ;;  %2869 = vmatprep.subr.bf16.mxu0 %v2868_v6  ;;  %2897 = vmatprep.subr.bf16.mxu1 %v2868_v6 }
  0xa3   : > { %356 = vst.msk [vmem:[#allocation2] sm:$0xff] %vm355_vm1, %v299_v9  ;;  %357 = vst.msk [vmem:[#allocation2 + $0x8] sm:$0xff] %vm355_vm1, %v300_v10  ;;  %v302_v16 = vld [vmem:[%s3666_s15 + $0x18] sm:$0xff]  ;;  %v304_v19 = vld [vmem:[%s3666_s15 + $0x28] sm:$0xff]  ;;  %v2876_v31 = vpack.c.bf16 %v485_v14, %v484_v13  ;;  %vm1118_vm3 = vcmask 261120   ;;  %vm1355_vm4 = vcmask 130112  }
  0xa4   : > { %387 = vst.msk [vmem:[#allocation2 + $0xf0] sm:$0xff] %vm355_vm1, %v329_v11  ;;  %388 = vst.msk [vmem:[#allocation2 + $0xf8] sm:$0xff] %vm355_vm1, %v330_v12  ;;  %v331_v20 = vld [vmem:[%s3666_s15 + $0x100] sm:$0xff]  ;;  %v332_v21 = vld [vmem:[%s3666_s15 + $0x108] sm:$0xff]  ;;  %vm1362_vm5 = vcmask 195712   ;;  %vm1369_vm6 = vcmask 261312  }
  0xa5   : > { %358 = vst.msk [vmem:[#allocation2 + $0x10] sm:$0xff] %vm355_vm1, %v301_v15  ;;  %359 = vst.msk [vmem:[#allocation2 + $0x18] sm:$0xff] %vm355_vm1, %v302_v16  ;;  %v305_v22 = vld [vmem:[%s3666_s15 + $0x30] sm:$0x1]  ;;  %v306_v24 = vld [vmem:[%s3666_s15 + $0x38] sm:$0xff]  ;;  %2871 = vmatpush3.bf16.msra.mxu0 %v2868_v6  ;;  %2901 = vmatpush3.bf16.msra.mxu1 %v2868_v6  ;;  %vm1376_vm7 = vcmask 326912  }
  0xa6   : > { %360 = vst.msk [vmem:[#allocation2 + $0x20] sm:$0xff] %vm355_vm1, %v303_v17  ;;  %361 = vst.msk [vmem:[#allocation2 + $0x28] sm:$0xff] %vm355_vm1, %v304_v19  ;;  %v333_v23 = vld [vmem:[%s3666_s15 + $0x110] sm:$0x1]  ;;  %v334_v25 = vld [vmem:[%s3666_s15 + $0x118] sm:$0xff]  ;;  %2873 = vmatprep.subr.bf16.mxu0 %v2872_v18  ;;  %2898 = vmatprep.subr.bf16.mxu1 %v2872_v18  ;;  %vm1383_vm8 = vcmask 392512  }
  0xa7   : > { %389 = vst.msk [vmem:[#allocation2 + $0x100] sm:$0xff] %vm355_vm1, %v331_v20  ;;  %390 = vst.msk [vmem:[#allocation2 + $0x108] sm:$0xff] %vm355_vm1, %v332_v21  ;;  %v335_v26 = vld [vmem:[%s3666_s15 + $0x120] sm:$0xff]  ;;  %v336_v27 = vld [vmem:[%s3666_s15 + $0x128] sm:$0xff]  ;;  %vm1390_vm9 = vcmask 458112   ;;  %vm1630_vm10 = vcmask 1041409  }
  0xa8   : > { %363 = vst.msk [vmem:[#allocation2 + $0x30] sm:$0x1] %vm362_vm2, %v305_v22  ;;  %391 = vst.msk [vmem:[#allocation2 + $0x110] sm:$0x1] %vm362_vm2, %v333_v23  ;;  %v307_v28 = vld [vmem:[%s3666_s15 + $0x40] sm:$0xff]  ;;  %v308_v29 = vld [vmem:[%s3666_s15 + $0x48] sm:$0xff] }
  0xa9   : > { %364 = vst.msk [vmem:[#allocation2 + $0x38] sm:$0xff] %vm355_vm1, %v306_v24  ;;  %392 = vst.msk [vmem:[#allocation2 + $0x118] sm:$0xff] %vm355_vm1, %v334_v25  ;;  %v337_v30 = vld [vmem:[%s3666_s15 + $0x130] sm:$0xff]  ;;  %v338_v32 = vld [vmem:[%s3666_s15 + $0x138] sm:$0xff]  ;;  %2875 = vmatpush3.bf16.msra.mxu0 %v2872_v18  ;;  %2902 = vmatpush3.bf16.msra.mxu1 %v2872_v18  ;;  %vm1632_vm11 = vcmask 1042434   ;;  %vm1634_vm12 = vcmask 1043459  }
  0xaa   : > { %393 = vst.msk [vmem:[#allocation2 + $0x120] sm:$0xff] %vm355_vm1, %v335_v26  ;;  %394 = vst.msk [vmem:[#allocation2 + $0x128] sm:$0xff] %vm355_vm1, %v336_v27  ;;  %v309_v33 = vld [vmem:[%s3666_s15 + $0x50] sm:$0xff]  ;;  %v310_v34 = vld [vmem:[%s3666_s15 + $0x58] sm:$0xff]  ;;  %2877 = vmatprep.subr.bf16.mxu0 %v2876_v31  ;;  %2899 = vmatprep.subr.bf16.mxu1 %v2876_v31  ;;  %vm1636_vm13 = vcmask 1044484   ;;  %vm1638_vm14 = vcmask 1045509  }
  0xab   : > { %365 = vst.msk [vmem:[#allocation2 + $0x40] sm:$0xff] %vm355_vm1, %v307_v28  ;;  %366 = vst.msk [vmem:[#allocation2 + $0x48] sm:$0xff] %vm355_vm1, %v308_v29  ;;  %v422_v35 = vld [vmem:[#allocation2] sm:$0xff]  ;;  %v340_v37 = vld [vmem:[%s3666_s15 + $0x148] sm:$0x1]  ;;  %vm1640_vm15 = vcmask 1046534  }
  0xac   : > { %395 = vst.msk [vmem:[#allocation2 + $0x130] sm:$0xff] %vm355_vm1, %v337_v30  ;;  %396 = vst.msk [vmem:[#allocation2 + $0x138] sm:$0xff] %vm355_vm1, %v338_v32  ;;  %v339_v36 = vld [vmem:[%s3666_s15 + $0x140] sm:$0xff]  ;;  %2761 = vmatprep.mubr.msk.f32.mxu0 %vm355_vm1, %v422_v35  ;;  %v452_v38 = vld [vmem:[#allocation2 + $0xf0] sm:$0xff]  ;;  %vm1642_vm0 = vcmask 1047559   ;;  %s3408_s24 = smov 32  }
  0xad   : > { %367 = vst.msk [vmem:[#allocation2 + $0x50] sm:$0xff] %vm355_vm1, %v309_v33  ;;  %368 = vst.msk [vmem:[#allocation2 + $0x58] sm:$0xff] %vm355_vm1, %v310_v34  ;;  %2806 = vmatprep.mubr.msk.f32.mxu1 %vm355_vm1, %v452_v38  ;;  %2879 = vmatpush3.bf16.msra.mxu0 %v2876_v31  ;;  %v423_v39 = vld [vmem:[#allocation2 + $0x8] sm:$0xff]  ;;  %v453_v40 = vld [vmem:[#allocation2 + $0xf8] sm:$0xff]  ;;  %s3409_s26 = smov 96   ;;  %s3410_s27 = smov 64  }
  0xae   : > { %397 = vst.msk [vmem:[#allocation2 + $0x140] sm:$0xff] %vm355_vm1, %v339_v36  ;;  %2903 = vmatpush3.bf16.msra.mxu1 %v2876_v31  ;;  %v424_v41 = vld [vmem:[#allocation2 + $0x10] sm:$0xff]  ;;  %v454_v42 = vld [vmem:[#allocation2 + $0x100] sm:$0xff]  ;;  %v425_v43 = vld [vmem:[#allocation2 + $0x18] sm:$0xff]  ;;  %s2606_s12 = sshll.u32 %s3662_s29, 3  ;;  %s2668_s16 = sshll.u32 %s3463_s22, 7 }
  0xaf   : > { %398 = vst.msk [vmem:[#allocation2 + $0x148] sm:$0x1] %vm362_vm2, %v340_v37  ;;  %v455_v44 = vld [vmem:[#allocation2 + $0x108] sm:$0xff]  ;;  %v311_v45 = vld [vmem:[%s3666_s15 + $0x60] sm:$0xff]  ;;  %v456_v47 = vld [vmem:[#allocation2 + $0x110] sm:$0xff]  ;;  %s297_s6 = scalar_lea.vmem [#allocation12], %s2606_s12  ;;  %s4867_s8 = scalar_lea.hbm %s4916_s5, %s2668_s16 }
  0xb0   : > { %2762 = vmatmul.mubr.msk.f32.vlgmr.msra.gmra.mrb[0].mxu0 %vm355_vm1, %v423_v39  ;;  %v426_v46 = vld [vmem:[#allocation2 + $0x20] sm:$0xff]  ;;  %369 = vst.msk [vmem:[#allocation2 + $0x60] sm:$0xff] %vm355_vm1, %v311_v45  ;;  %v312_v48 = vld [vmem:[%s3666_s15 + $0x68] sm:$0x1]  ;;  %v341_v49 = vld [vmem:[%s3666_s15 + $0x150] sm:$0xff]  ;;  %s2483_s28 = sshll.u32 %s297_s6, 4  ;;  %s4869_s28 = int_to_ptr.vmem [resolvable:$true] %s2483_s28 }
  0xb1   : > { %2807 = vmatmul.mubr.msk.f32.vlgmr.msra.gmra.mrb[0].mxu1 %vm355_vm1, %v453_v40  ;;  %v342_v50 = vld [vmem:[%s3666_s15 + $0x158] sm:$0xff]  ;;  %2764 = vmatprep.mubr.msk.f32.mxu0 %vm355_vm1, %v424_v41  ;;  %370 = vst.msk [vmem:[#allocation2 + $0x68] sm:$0x1] %vm362_vm2, %v312_v48  ;;  %v343_v51 = vld [vmem:[%s3666_s15 + $0x160] sm:$0xff]  ;;  %v344_v52 = vld [vmem:[%s3666_s15 + $0x168] sm:$0xff]  ;;  %s2470_s22 = scalar_lea.sflag [#allocation5], %s3662_s29 }
  0xb2   : > { %2809 = vmatprep.mubr.msk.f32.mxu1 %vm355_vm1, %v454_v42  ;;  %399 = vst.msk [vmem:[#allocation2 + $0x150] sm:$0xff] %vm355_vm1, %v341_v49  ;;  %400 = vst.msk [vmem:[#allocation2 + $0x158] sm:$0xff] %vm355_vm1, %v342_v50  ;;  %v313_v53 = vld [vmem:[%s3666_s15 + $0x70] sm:$0xff]  ;;  %v314_v54 = vld [vmem:[%s3666_s15 + $0x78] sm:$0xff]  ;;  %s3324_s23 = scalar_lea.vmem %s4869_s28, 128  ;;  %s3411_s17 = smov [#allocation12]  }
  0xb3   : > { %401 = vst.msk [vmem:[#allocation2 + $0x160] sm:$0xff] %vm355_vm1, %v343_v51  ;;  %402 = vst.msk [vmem:[#allocation2 + $0x168] sm:$0xff] %vm355_vm1, %v344_v52  ;;  %v315_v55 = vld [vmem:[%s3666_s15 + $0x80] sm:$0xff]  ;;  %v316_v56 = vld [vmem:[%s3666_s15 + $0x88] sm:$0xff]  ;;  %p3325_p3 = scmp.ne.s32.totalorder %s4869_s28, %s3324_s23  ;;  %s3328_s7 = sshll.u32 %s3411_s17, 4  ;;  %s3329_s7 = int_to_ptr.vmem [resolvable:$false] %s3328_s7 }
  0xb4   : > { %371 = vst.msk [vmem:[#allocation2 + $0x70] sm:$0xff] %vm355_vm1, %v313_v53  ;;  %v427_v57 = vld [vmem:[#allocation2 + $0x28] sm:$0xff]  ;;  %v457_v58 = vld [vmem:[#allocation2 + $0x118] sm:$0xff]  ;;  %372 = vst.msk [vmem:[#allocation2 + $0x78] sm:$0xff] %vm355_vm1, %v314_v54  ;;  %2765 = vmatmul.mubr.msk.f32.gmra.mrb[2].mxu0 %vm355_vm1, %v425_v43  ;;  %s3330_s13 = scalar_lea.vmem %s3329_s7, 256  ;;  %p3331_p12 = scmp.lt.s32.totalorder %s4869_s28, %s3329_s7 }
  0xb5   : > { %373 = vst.msk [vmem:[#allocation2 + $0x80] sm:$0xff] %vm355_vm1, %v315_v55  ;;  %374 = vst.msk [vmem:[#allocation2 + $0x88] sm:$0xff] %vm355_vm1, %v316_v56  ;;  %v345_v59 = vld [vmem:[%s3666_s15 + $0x170] sm:$0xff]  ;;  %v346_v60 = vld [vmem:[%s3666_s15 + $0x178] sm:$0xff]  ;;  %2810 = vmatmul.mubr.msk.f32.gmra.mrb[2].mxu1 %vm355_vm1, %v455_v44  ;;  %2767 = vmatprep.mubr.msk.f32.mxu0 %vm355_vm1, %v426_v46  ;;  %p3326_p5 = pnand %p3325_p3, %p3607_p10  ;;  %p3332_p1 = scmp.lt.s32.totalorder %s3330_s13, %s3324_s23 }
  0xb6   : > { %v347_v61 = vld [vmem:[%s3666_s15 + $0x180] sm:$0x1]  ;;  %v428_v62 = vld [vmem:[#allocation2 + $0x30] sm:$0xff]  ;;  %403 = vst.msk [vmem:[#allocation2 + $0x170] sm:$0xff] %vm355_vm1, %v345_v59  ;;  %404 = vst.msk [vmem:[#allocation2 + $0x178] sm:$0xff] %vm355_vm1, %v346_v60  ;;  %2812 = vmatprep.mubr.msk.f32.mxu1 %vm355_vm1, %v456_v47 }
  0xb7   : > { %v458_v63 = vld [vmem:[#allocation2 + $0x120] sm:$0xff]  ;;  %405 = vst.msk [vmem:[#allocation2 + $0x180] sm:$0x1] %vm362_vm2, %v347_v61  ;;  %v348_v0 = vld [vmem:[%s3666_s15 + $0x188] sm:$0xff]  ;;  %v317_v1 = vld [vmem:[%s3666_s15 + $0x90] sm:$0xff]  ;;  %p3327_p7 = pneg %p3326_p5  ;;  %p3333_p2 = por %p3332_p1, %p3331_p12 }
  0xb8   : > { %v318_v2 = vld [vmem:[%s3666_s15 + $0x98] sm:$0xff]  ;;  %406 = vst.msk [vmem:[#allocation2 + $0x188] sm:$0xff] %vm355_vm1, %v348_v0  ;;  %375 = vst.msk [vmem:[#allocation2 + $0x90] sm:$0xff] %vm355_vm1, %v317_v1  ;;  %v319_v3 = vld [vmem:[%s3666_s15 + $0xa0] sm:$0x1]  ;;  %2768 = vmatmul.mubr.msk.f32.gmra.mrb[4].mxu0 %vm355_vm1, %v427_v57 }
  0xb9   : > { %376 = vst.msk [vmem:[#allocation2 + $0x98] sm:$0xff] %vm355_vm1, %v318_v2  ;;  %v320_v4 = vld [vmem:[%s3666_s15 + $0xa8] sm:$0xff]  ;;  %v349_v5 = vld [vmem:[%s3666_s15 + $0x190] sm:$0xff]  ;;  %v350_v6 = vld [vmem:[%s3666_s15 + $0x198] sm:$0xff]  ;;  %2813 = vmatmul.mubr.msk.f32.gmra.mrb[4].mxu1 %vm355_vm1, %v457_v58  ;;  %2770 = vmatprep.mubr.msk.f32.mxu0 %vm355_vm1, %v428_v62  ;;  %p3334_p13 = pnand %p3333_p2, %p3327_p7 }
  0xba   : > { %377 = vst.msk [vmem:[#allocation2 + $0xa0] sm:$0x1] %vm362_vm2, %v319_v3  ;;  %v351_v7 = vld [vmem:[%s3666_s15 + $0x1a0] sm:$0xff]  ;;  %v321_v8 = vld [vmem:[%s3666_s15 + $0xb0] sm:$0xff]  ;;  %v352_v9 = vld [vmem:[%s3666_s15 + $0x1a8] sm:$0xff]  ;;  %2815 = vmatprep.mubr.msk.f32.mxu1 %vm355_vm1, %v458_v63 }
  0xbb   : > { %378 = vst.msk [vmem:[#allocation2 + $0xa8] sm:$0xff] %vm355_vm1, %v320_v4  ;;  %407 = vst.msk [vmem:[#allocation2 + $0x190] sm:$0xff] %vm355_vm1, %v349_v5  ;;  %v322_v10 = vld [vmem:[%s3666_s15 + $0xb8] sm:$0xff]  ;;  %v459_v12 = vld [vmem:[#allocation2 + $0x128] sm:$0xff] }
  0xbc   : > { %408 = vst.msk [vmem:[#allocation2 + $0x198] sm:$0xff] %vm355_vm1, %v350_v6  ;;  %409 = vst.msk [vmem:[#allocation2 + $0x1a0] sm:$0xff] %vm355_vm1, %v351_v7  ;;  %v429_v11 = vld [vmem:[#allocation2 + $0x38] sm:$0xff]  ;;  %v430_v13 = vld [vmem:[#allocation2 + $0x40] sm:$0xff] }
  0xbd   : > { %379 = vst.msk [vmem:[#allocation2 + $0xb0] sm:$0xff] %vm355_vm1, %v321_v8  ;;  %410 = vst.msk [vmem:[#allocation2 + $0x1a8] sm:$0xff] %vm355_vm1, %v352_v9  ;;  %v460_v14 = vld [vmem:[#allocation2 + $0x130] sm:$0xff]  ;;  %2771 = vmatmul.mubr.msk.f32.gmra.mrb[6].mxu0 %vm355_vm1, %v429_v11  ;;  %2816 = vmatmul.mubr.msk.f32.gmra.mrb[6].mxu1 %vm355_vm1, %v459_v12  ;;  %v431_v15 = vld [vmem:[#allocation2 + $0x48] sm:$0xff] }
  0xbe   : > { %380 = vst.msk [vmem:[#allocation2 + $0xb8] sm:$0xff] %vm355_vm1, %v322_v10  ;;  %2773 = vmatprep.mubr.msk.f32.mxu0 %vm355_vm1, %v430_v13  ;;  %2818 = vmatprep.mubr.msk.f32.mxu1 %vm355_vm1, %v460_v14  ;;  %v461_v16 = vld [vmem:[#allocation2 + $0x138] sm:$0xff]  ;;  %v432_v17 = vld [vmem:[#allocation2 + $0x50] sm:$0xff]  ;;  %v462_v18 = vld [vmem:[#allocation2 + $0x140] sm:$0xff] }
  0xbf   : > { %v433_v19 = vld [vmem:[#allocation2 + $0x58] sm:$0xff]  ;;  %v463_v20 = vld [vmem:[#allocation2 + $0x148] sm:$0xff]  ;;  %v323_v21 = vld [vmem:[%s3666_s15 + $0xc0] sm:$0xff] }
  0xc0   : > { %381 = vst.msk [vmem:[#allocation2 + $0xc0] sm:$0xff] %vm355_vm1, %v323_v21  ;;  %v324_v22 = vld [vmem:[%s3666_s15 + $0xc8] sm:$0xff]  ;;  %v325_v23 = vld [vmem:[%s3666_s15 + $0xd0] sm:$0xff]  ;;  %v326_v24 = vld [vmem:[%s3666_s15 + $0xd8] sm:$0x1] }
  0xc1   : > { %2774 = vmatmul.mubr.msk.f32.gmra.mrb[8].mxu0 %vm355_vm1, %v431_v15  ;;  %2819 = vmatmul.mubr.msk.f32.gmra.mrb[8].mxu1 %vm355_vm1, %v461_v16  ;;  %382 = vst.msk [vmem:[#allocation2 + $0xc8] sm:$0xff] %vm355_vm1, %v324_v22  ;;  %383 = vst.msk [vmem:[#allocation2 + $0xd0] sm:$0xff] %vm355_vm1, %v325_v23  ;;  %v327_v25 = vld [vmem:[%s3666_s15 + $0xe0] sm:$0xff]  ;;  %v328_v26 = vld [vmem:[%s3666_s15 + $0xe8] sm:$0xff] }
  0xc2   : > { %2776 = vmatprep.mubr.msk.f32.mxu0 %vm355_vm1, %v432_v17  ;;  %2821 = vmatprep.mubr.msk.f32.mxu1 %vm355_vm1, %v462_v18  ;;  %384 = vst.msk [vmem:[#allocation2 + $0xd8] sm:$0x1] %vm362_vm2, %v326_v24  ;;  %v353_v27 = vld [vmem:[%s3666_s15 + $0x1b0] sm:$0xff]  ;;  %v434_v28 = vld [vmem:[#allocation2 + $0x60] sm:$0xff]  ;;  %v354_v30 = vld [vmem:[%s3666_s15 + $0x1b8] sm:$0x1] }
  0xc3   : > { %v464_v29 = vld [vmem:[#allocation2 + $0x150] sm:$0xff]  ;;  %385 = vst.msk [vmem:[#allocation2 + $0xe0] sm:$0xff] %vm355_vm1, %v327_v25  ;;  %386 = vst.msk [vmem:[#allocation2 + $0xe8] sm:$0xff] %vm355_vm1, %v328_v26  ;;  %v435_v31 = vld [vmem:[#allocation2 + $0x68] sm:$0xff] }
  0xc4   : > { %411 = vst.msk [vmem:[#allocation2 + $0x1b0] sm:$0xff] %vm355_vm1, %v353_v27  ;;  %v465_v32 = vld [vmem:[#allocation2 + $0x158] sm:$0xff]  ;;  %v466_v33 = vld [vmem:[#allocation2 + $0x160] sm:$0xff]  ;;  %v436_v34 = vld [vmem:[#allocation2 + $0x70] sm:$0xff] }
  0xc5   : > { %412 = vst.msk [vmem:[#allocation2 + $0x1b8] sm:$0x1] %vm362_vm2, %v354_v30  ;;  %2777 = vmatmul.mubr.msk.f32.gmra.mrb[10].mxu0 %vm355_vm1, %v433_v19  ;;  %2822 = vmatmul.mubr.msk.f32.gmra.mrb[10].mxu1 %vm355_vm1, %v463_v20  ;;  %v467_v35 = vld [vmem:[#allocation2 + $0x168] sm:$0xff]  ;;  %v437_v36 = vld [vmem:[#allocation2 + $0x78] sm:$0xff]  ;;  %v438_v37 = vld [vmem:[#allocation2 + $0x80] sm:$0xff] }
  0xc6   : > { %2779 = vmatprep.mubr.msk.f32.mxu0 %vm355_vm1, %v434_v28  ;;  %2824 = vmatprep.mubr.msk.f32.mxu1 %vm355_vm1, %v464_v29  ;;  %v468_v38 = vld [vmem:[#allocation2 + $0x170] sm:$0xff]  ;;  %v439_v39 = vld [vmem:[#allocation2 + $0x88] sm:$0xff]  ;;  %v469_v40 = vld [vmem:[#allocation2 + $0x178] sm:$0xff] }
  0xc7   : > { %v470_v41 = vld [vmem:[#allocation2 + $0x180] sm:$0xff]  ;;  %v440_v42 = vld [vmem:[#allocation2 + $0x90] sm:$0xff]  ;;  %v471_v43 = vld [vmem:[#allocation2 + $0x188] sm:$0xff] }
  0xc8   : > { %v441_v44 = vld [vmem:[#allocation2 + $0x98] sm:$0xff]  ;;  %v442_v45 = vld [vmem:[#allocation2 + $0xa0] sm:$0xff]  ;;  %v472_v46 = vld [vmem:[#allocation2 + $0x190] sm:$0xff] }
  0xc9   : > { %2780 = vmatmul.mubr.msk.f32.gmra.mrb[12].mxu0 %vm355_vm1, %v435_v31  ;;  %2825 = vmatmul.mubr.msk.f32.gmra.mrb[12].mxu1 %vm355_vm1, %v465_v32  ;;  %v443_v47 = vld [vmem:[#allocation2 + $0xa8] sm:$0xff]  ;;  %v473_v48 = vld [vmem:[#allocation2 + $0x198] sm:$0xff]  ;;  %v474_v49 = vld [vmem:[#allocation2 + $0x1a0] sm:$0xff] }
  0xca   : > { %2827 = vmatprep.mubr.msk.f32.mxu1 %vm355_vm1, %v466_v33  ;;  %2782 = vmatprep.mubr.msk.f32.mxu0 %vm355_vm1, %v436_v34  ;;  %v444_v50 = vld [vmem:[#allocation2 + $0xb0] sm:$0xff]  ;;  %v475_v51 = vld [vmem:[#allocation2 + $0x1a8] sm:$0xff]  ;;  %v445_v52 = vld [vmem:[#allocation2 + $0xb8] sm:$0xff] }
  0xcb   : > { %v446_v53 = vld [vmem:[#allocation2 + $0xc0] sm:$0xff]  ;;  %v476_v54 = vld [vmem:[#allocation2 + $0x1b0] sm:$0xff]  ;;  %v447_v55 = vld [vmem:[#allocation2 + $0xc8] sm:$0xff] }
  0xcc   : > { %v477_v56 = vld [vmem:[#allocation2 + $0x1b8] sm:$0xff]  ;;  %v448_v57 = vld [vmem:[#allocation2 + $0xd0] sm:$0xff]  ;;  %v450_v59 = vld [vmem:[#allocation2 + $0xe0] sm:$0xff] }
  0xcd   : > { %2828 = vmatmul.mubr.msk.f32.gmra.mrb[14].mxu1 %vm355_vm1, %v467_v35  ;;  %2783 = vmatmul.mubr.msk.f32.gmra.mrb[14].mxu0 %vm355_vm1, %v437_v36  ;;  %v449_v58 = vld [vmem:[#allocation2 + $0xd8] sm:$0xff]  ;;  %v451_v60 = vld [vmem:[#allocation2 + $0xe8] sm:$0xff]  ;;  %v3848_v8 = vld [vmem:[#allocation8] ss:$0 sm:$0xff] }
  0xce   : > { %2785 = vmatprep.mubr.msk.f32.mxu0 %vm355_vm1, %v438_v37  ;;  %2830 = vmatprep.mubr.msk.f32.mxu1 %vm355_vm1, %v468_v38 }
  0xd1   : > { %2786 = vmatmul.mubr.msk.f32.gmra.mrb[16].mxu0 %vm355_vm1, %v439_v39  ;;  %2831 = vmatmul.mubr.msk.f32.gmra.mrb[16].mxu1 %vm355_vm1, %v469_v40 }
  0xd2   : > { %2833 = vmatprep.mubr.msk.f32.mxu1 %vm355_vm1, %v470_v41  ;;  %2788 = vmatprep.mubr.msk.f32.mxu0 %vm355_vm1, %v440_v42 }
  0xd5   : > { %2834 = vmatmul.mubr.msk.f32.gmra.mrb[18].mxu1 %vm355_vm1, %v471_v43  ;;  %2789 = vmatmul.mubr.msk.f32.gmra.mrb[18].mxu0 %vm355_vm1, %v441_v44 }
  0xd6   : > { %2791 = vmatprep.mubr.msk.f32.mxu0 %vm355_vm1, %v442_v45  ;;  %2836 = vmatprep.mubr.msk.f32.mxu1 %vm355_vm1, %v472_v46 }
  0xd9   : > { %2792 = vmatmul.mubr.msk.f32.gmra.mrb[20].mxu0 %vm355_vm1, %v443_v47  ;;  %2837 = vmatmul.mubr.msk.f32.gmra.mrb[20].mxu1 %vm355_vm1, %v473_v48 }
  0xda   : > { %2839 = vmatprep.mubr.msk.f32.mxu1 %vm355_vm1, %v474_v49  ;;  %2794 = vmatprep.mubr.msk.f32.mxu0 %vm355_vm1, %v444_v50 }
  0xdd   : > { %2840 = vmatmul.mubr.msk.f32.gmra.mrb[22].mxu1 %vm355_vm1, %v475_v51  ;;  %2795 = vmatmul.mubr.msk.f32.gmra.mrb[22].mxu0 %vm355_vm1, %v445_v52 }
  0xde   : > { %2797 = vmatprep.mubr.msk.f32.mxu0 %vm355_vm1, %v446_v53  ;;  %2842 = vmatprep.mubr.msk.f32.mxu1 %vm355_vm1, %v476_v54 }
  0xe1   : > { %2798 = vmatmul.mubr.msk.f32.gmra.mrb[24].mxu0 %vm355_vm1, %v447_v55  ;;  %2843 = vmatmul.mubr.msk.f32.gmra.mrb[24].mxu1 %vm355_vm1, %v477_v56 }
  0xe2   : > { %2800 = vmatprep.mubr.msk.f32.mxu0 %vm355_vm1, %v448_v57 }
  0xe5   : > { %2801 = vmatmul.mubr.msk.f32.gmra.mrb[26].mxu0 %vm355_vm1, %v449_v58 }
  0xe6   : > { %2803 = vmatprep.mubr.msk.f32.mxu0 %vm355_vm1, %v450_v59 }
  0xe9   : > { %2804 = vmatmul.mubr.msk.f32.gmra.mrb[28].mxu0 %vm355_vm1, %v451_v60 }
 0x183   : > { %v2763_v61 = vpop.f32.mrb[0].mxu0 }
 0x184   : > { %v2808_v62 = vpop.f32.mrb[0].mxu1  ;;  %3000 = vtanh.f32 %v2763_v61  ;;  %v720_v63 = vpop.f32.mrb[1].mxu0 }
 0x185   : > { %v870_v0 = vpop.f32.mrb[1].mxu1  ;;  %3002 = vtanh.f32 %v720_v63 }
 0x186   : > { %3004 = vtanh.f32 %v2808_v62 }
 0x187   : > { %3006 = vtanh.f32 %v870_v0  ;;  %v2766_v1 = vpop.f32.mrb[2].mxu0 }
 0x188   : > { %v2811_v2 = vpop.f32.mrb[2].mxu1  ;;  %v730_v3 = vpop.f32.mrb[3].mxu0  ;;  %3008 = vtanh.f32 %v2766_v1 }
 0x189   : > { %v880_v4 = vpop.f32.mrb[3].mxu1  ;;  %3010 = vtanh.f32 %v730_v3 }
 0x18a   : > { %3012 = vtanh.f32 %v2811_v2 }
 0x18b   : > { %v2769_v5 = vpop.f32.mrb[4].mxu0 }
 0x18c   : > { %v2814_v6 = vpop.f32.mrb[4].mxu1  ;;  %3014 = vtanh.f32 %v2769_v5  ;;  %v740_v7 = vpop.f32.mrb[5].mxu0 }
 0x18d   : > { %v890_v9 = vpop.f32.mrb[5].mxu1  ;;  %3016 = vtanh.f32 %v740_v7 }
 0x18e   : > { %v3001_v10 = vpop.eup %3000  ;;  %3018 = vtanh.f32 %v880_v4 }
 0x18f   : > { %v3003_v11 = vpop.eup %3002  ;;  %3020 = vtanh.f32 %v2814_v6  ;;  %v1063_v12 = vmul.f32 %v3001_v10, %v3848_v8 }
 0x190   : > { %v2772_v13 = vpop.f32.mrb[6].mxu0  ;;  %v2817_v14 = vpop.f32.mrb[6].mxu1  ;;  %v1062_v28 = vmul.f32 %v3003_v11, %v3848_v8 }
 0x191   : > { %v3005_v15 = vpop.eup %3004  ;;  %3022 = vtanh.f32 %v2772_v13  ;;  %v750_v16 = vpop.f32.mrb[7].mxu0  ;;  %v1122_v19 = vsel %vm1118_vm3, %v1063_v12, 0.0 }
 0x192   : > { %v900_v17 = vpop.f32.mrb[7].mxu1  ;;  %v3007_v18 = vpop.eup %3006  ;;  %3024 = vtanh.f32 %v890_v9  ;;  %v1093_v20 = vmul.f32 %v3005_v15, %v3848_v8  ;;  %1123 = vadd.xlane.f32.xlu0 %v1122_v19  ;;  %v1119_v38 = vsel %vm1118_vm3, %v1062_v28, 0.0 }
 0x193   : > { %v1092_v21 = vmul.f32 %v3007_v18, %v3848_v8  ;;  %3026 = vtanh.f32 %v2817_v14  ;;  %v3009_v22 = vpop.eup %3008 }
 0x194   : > { %3028 = vtanh.f32 %v750_v16  ;;  %v1212_v23 = vsel %vm1118_vm3, %v1093_v20, 0.0  ;;  %v2775_v24 = vpop.f32.mrb[8].mxu0  ;;  %v2820_v25 = vpop.f32.mrb[8].mxu1  ;;  %v1065_v43 = vmul.f32 %v3009_v22, %v3848_v8 }
 0x195   : > { %v3011_v26 = vpop.eup %3010  ;;  %v1209_v27 = vsel %vm1118_vm3, %v1092_v21, 0.0  ;;  %3030 = vtanh.f32 %v900_v17  ;;  %v760_v29 = vpop.f32.mrb[9].mxu0 }
 0x196   : > { %v910_v30 = vpop.f32.mrb[9].mxu1  ;;  %v3013_v31 = vpop.eup %3012  ;;  %1210 = vadd.xlane.f32.xlu1 %v1209_v27  ;;  %3032 = vtanh.f32 %v2775_v24  ;;  %1213 = vadd.xlane.f32.xlu0 %v1212_v23  ;;  %v1128_v54 = vsel %vm1118_vm3, %v1065_v43, 0.0  ;;  %v1064_v4 = vmul.f32 %v3011_v26, %v3848_v8 }
 0x197   : > { %v3015_v32 = vpop.eup %3014  ;;  %3034 = vtanh.f32 %v760_v29  ;;  %v1095_v56 = vmul.f32 %v3013_v31, %v3848_v8 }
 0x198   : > { %v3017_v33 = vpop.eup %3016  ;;  %v1067_v34 = vmul.f32 %v3015_v32, %v3848_v8  ;;  %3036 = vtanh.f32 %v2820_v25  ;;  %v2778_v35 = vpop.f32.mrb[10].mxu0  ;;  %v1125_v15 = vsel %vm1118_vm3, %v1064_v4, 0.0 }
 0x199   : > { %v2823_v36 = vpop.f32.mrb[10].mxu1  ;;  %v3019_v37 = vpop.eup %3018  ;;  %3038 = vtanh.f32 %v910_v30  ;;  %v1066_v44 = vmul.f32 %v3017_v33, %v3848_v8  ;;  %v1218_v3 = vsel %vm1118_vm3, %v1095_v56, 0.0 }
 0x19a   : > { %v770_v39 = vpop.f32.mrb[11].mxu0  ;;  %v920_v40 = vpop.f32.mrb[11].mxu1  ;;  %v1134_v42 = vsel %vm1118_vm3, %v1067_v34, 0.0  ;;  %3040 = vtanh.f32 %v2778_v35  ;;  %1120 = vadd.xlane.f32.xlu0 %v1119_v38  ;;  %v1094_v16 = vmul.f32 %v3019_v37, %v3848_v8 }
 0x19b   : > { %v3859_v41 = vpop.eup %3020  ;;  %1135 = vadd.xlane.f32.xlu1 %v1134_v42  ;;  %3042 = vtanh.f32 %v770_v39  ;;  %v1131_v55 = vsel %vm1118_vm3, %v1066_v44, 0.0 }
 0x19c   : > { %v3023_v45 = vpop.eup %3022  ;;  %3044 = vtanh.f32 %v2823_v36  ;;  %v2781_v48 = vpop.f32.mrb[12].mxu0  ;;  %v1215_v27 = vsel %vm1118_vm3, %v1094_v16, 0.0  ;;  %v1097_v29 = vmul.f32 %v3859_v41, %v3848_v8 }
 0x19d   : > { %v3864_v46 = vpop.eup %3024  ;;  %v1069_v47 = vmul.f32 %v3023_v45, %v3848_v8  ;;  %v2826_v49 = vpop.f32.mrb[12].mxu1  ;;  %3046 = vtanh.f32 %v920_v40 }
 0x19e   : > { %v3027_v50 = vpop.eup %3026  ;;  %v780_v51 = vpop.f32.mrb[13].mxu0  ;;  %3048 = vtanh.f32 %v2781_v48  ;;  %1129 = vadd.xlane.f32.xlu0 %v1128_v54  ;;  %v1224_v41 = vsel %vm1118_vm3, %v1097_v29, 0.0  ;;  %v1096_v42 = vmul.f32 %v3864_v46, %v3848_v8 }
 0x19f   : > { %v930_v52 = vpop.f32.mrb[13].mxu1  ;;  %v3867_v53 = vpop.eup %3028  ;;  %1132 = vadd.xlane.f32.xlu1 %v1131_v55  ;;  %3050 = vtanh.f32 %v780_v51  ;;  %v1140_v59 = vsel %vm1118_vm3, %v1069_v47, 0.0  ;;  %v1099_v60 = vmul.f32 %v3027_v50, %v3848_v8 }
 0x1a0   : > { %v3031_v57 = vpop.eup %3030  ;;  %3052 = vtanh.f32 %v2826_v49  ;;  %v2829_v61 = vpop.f32.mrb[14].mxu1  ;;  %v1068_v51 = vmul.f32 %v3867_v53, %v3848_v8  ;;  %v1221_v56 = vsel %vm1118_vm3, %v1096_v42, 0.0 }
 0x1a1   : > { %v3033_v58 = vpop.eup %3032  ;;  %v2784_v62 = vpop.f32.mrb[14].mxu0  ;;  %3054 = vtanh.f32 %v930_v52  ;;  %v1230_v7 = vsel %vm1118_vm3, %v1099_v60, 0.0  ;;  %v1098_v17 = vmul.f32 %v3031_v57, %v3848_v8 }
 0x1a2   : > { %v3874_v63 = vpop.eup %3034  ;;  %v940_v0 = vpop.f32.mrb[15].mxu1  ;;  %1219 = vadd.xlane.f32.xlu0 %v1218_v3  ;;  %v1071_v20 = vmul.f32 %v3033_v58, %v3848_v8  ;;  %v1137_v3 = vsel %vm1118_vm3, %v1068_v51, 0.0 }
 0x1a3   : > { %v3876_v1 = vpop.f32.mrb[15].mxu0  ;;  %v3037_v2 = vpop.eup %3036  ;;  %3056 = vtanh.f32 %v940_v0  ;;  %1141 = vadd.xlane.f32.xlu1 %v1140_v59  ;;  %v1227_v28 = vsel %vm1118_vm3, %v1098_v17, 0.0  ;;  %v1070_v57 = vmul.f32 %v3874_v63, %v3848_v8 }
 0x1a4   : > { %v3880_v5 = vpop.eup %3038  ;;  %3058 = vtanh.f32 %v2829_v61  ;;  %v2787_v9 = vpop.f32.mrb[16].mxu0  ;;  %v1146_v32 = vsel %vm1118_vm3, %v1071_v20, 0.0  ;;  %v1101_v33 = vmul.f32 %v3037_v2, %v3848_v8 }
 0x1a5   : > { %v3882_v6 = vpop.eup %3040  ;;  %3060 = vtanh.f32 %v2784_v62  ;;  %v2832_v10 = vpop.f32.mrb[16].mxu1 }
 0x1a6   : > { %v3885_v11 = vpop.eup %3042  ;;  %3062 = vtanh.f32 %v2787_v9  ;;  %v800_v12 = vpop.f32.mrb[17].mxu0  ;;  %1126 = vadd.xlane.f32.xlu0 %v1125_v15  ;;  %v1236_v45 = vsel %vm1118_vm3, %v1101_v33, 0.0  ;;  %v1073_v61 = vmul.f32 %v3882_v6, %v3848_v8  ;;  %v1100_v6 = vmul.f32 %v3880_v5, %v3848_v8 }
 0x1a7   : > { %v950_v13 = vpop.f32.mrb[17].mxu1  ;;  %v3887_v14 = vpop.eup %3044  ;;  %3064 = vtanh.f32 %v800_v12  ;;  %1231 = vadd.xlane.f32.xlu1 %v1230_v7  ;;  %v1143_v12 = vsel %vm1118_vm3, %v1070_v57, 0.0  ;;  %v1072_v16 = vmul.f32 %v3885_v11, %v3848_v8 }
 0x1a8   : > { %v3892_v18 = vpop.eup %3046  ;;  %3066 = vtanh.f32 %v2832_v10  ;;  %v2835_v21 = vpop.f32.mrb[18].mxu1  ;;  %v1103_v5 = vmul.f32 %v3887_v14, %v3848_v8  ;;  %v1233_v29 = vsel %vm1118_vm3, %v1100_v6, 0.0 }
 0x1a9   : > { %v3894_v19 = vpop.eup %3048  ;;  %3068 = vtanh.f32 %v950_v13  ;;  %v2790_v22 = vpop.f32.mrb[18].mxu0  ;;  %v1149_v14 = vsel %vm1118_vm3, %v1072_v16, 0.0 }
 0x1aa   : > { %v3897_v23 = vpop.eup %3050  ;;  %3070 = vtanh.f32 %v2835_v21  ;;  %v960_v24 = vpop.f32.mrb[19].mxu1  ;;  %1216 = vadd.xlane.f32.xlu0 %v1215_v27  ;;  %v1152_v21 = vsel %vm1118_vm3, %v1073_v61, 0.0 }
 0x1ab   : > { %v810_v25 = vpop.f32.mrb[19].mxu0  ;;  %v3899_v26 = vpop.eup %3052  ;;  %3072 = vtanh.f32 %v960_v24  ;;  %1228 = vadd.xlane.f32.xlu1 %v1227_v28 }
 0x1ac   : > { %v3905_v30 = vpop.eup %3054  ;;  %3074 = vtanh.f32 %v2790_v22  ;;  %v2793_v34 = vpop.f32.mrb[20].mxu0 }
 0x1ad   : > { %v3057_v31 = vpop.eup %3056  ;;  %3076 = vtanh.f32 %v810_v25  ;;  %v2838_v35 = vpop.f32.mrb[20].mxu1 }
 0x1ae   : > { %v3909_v36 = vpop.eup %3058  ;;  %v3912_v37 = vmul.f32 %v3057_v31, %v3848_v8  ;;  %3078 = vtanh.f32 %v2793_v34  ;;  %v820_v38 = vpop.f32.mrb[21].mxu0  ;;  %1225 = vadd.xlane.f32.xlu0 %v1224_v41 }
 0x1af   : > { %v970_v39 = vpop.f32.mrb[21].mxu1  ;;  %v3914_v40 = vpop.eup %3060  ;;  %3080 = vtanh.f32 %v820_v38  ;;  %1147 = vadd.xlane.f32.xlu1 %v1146_v32  ;;  %v1102_v38 = vmul.f32 %v3892_v18, %v3848_v8 }
 0x1b0   : > { %v3063_v43 = vpop.eup %3062  ;;  %3082 = vtanh.f32 %v2838_v35  ;;  %v2841_v48 = vpop.f32.mrb[22].mxu1  ;;  %v1242_v35 = vsel %vm1118_vm3, %v1103_v5, 0.0  ;;  %v1077_v16 = vmul.f32 %v3914_v40, %v3848_v8  ;;  %v1251_v40 = vsel %vm1118_vm3, %v3912_v37, 0.0 }
 0x1b1   : > { %v3065_v44 = vpop.eup %3064  ;;  %v3921_v47 = vmul.f32 %v3063_v43, %v3848_v8  ;;  %3084 = vtanh.f32 %v970_v39  ;;  %v2796_v49 = vpop.f32.mrb[22].mxu0  ;;  %v1074_v39 = vmul.f32 %v3897_v23, %v3848_v8 }
 0x1b2   : > { %v3067_v50 = vpop.eup %3066  ;;  %v3926_v46 = vmul.f32 %v3065_v44, %v3848_v8  ;;  %3086 = vtanh.f32 %v2841_v48  ;;  %v980_v52 = vpop.f32.mrb[23].mxu1  ;;  %1222 = vadd.xlane.f32.xlu0 %v1221_v56 }
 0x1b3   : > { %v830_v54 = vpop.f32.mrb[23].mxu0  ;;  %v3069_v55 = vpop.eup %3068  ;;  %v3932_v58 = vmul.f32 %v3067_v50, %v3848_v8  ;;  %3088 = vtanh.f32 %v980_v52  ;;  %1237 = vadd.xlane.f32.xlu1 %v1236_v45  ;;  %v1239_v50 = vsel %vm1118_vm3, %v1102_v38, 0.0  ;;  %v1155_v51 = vsel %vm1118_vm3, %v1074_v39, 0.0 }
 0x1b4   : > { %v3071_v59 = vpop.eup %3070  ;;  %v3935_v53 = vmul.f32 %v3069_v55, %v3848_v8  ;;  %3090 = vtanh.f32 %v2796_v49  ;;  %v2799_v63 = vpop.f32.mrb[24].mxu0  ;;  %v1104_v52 = vmul.f32 %v3905_v30, %v3848_v8 }
 0x1b5   : > { %v3073_v60 = vpop.eup %3072  ;;  %v3940_v62 = vmul.f32 %v3071_v59, %v3848_v8  ;;  %3092 = vtanh.f32 %v830_v54  ;;  %v2844_v0 = vpop.f32.mrb[24].mxu1  ;;  %v1075_v59 = vmul.f32 %v3894_v19, %v3848_v8 }
 0x1b6   : > { %v3075_v2 = vpop.eup %3074  ;;  %3094 = vtanh.f32 %v2799_v63  ;;  %v840_v4 = vpop.f32.mrb[25].mxu0  ;;  %v3944_v9 = vmul.f32 %v3073_v60, %v3848_v8  ;;  %1138 = vadd.xlane.f32.xlu0 %v1137_v3 }
 0x1b7   : > { %v990_v7 = vpop.f32.mrb[25].mxu1  ;;  %v3077_v10 = vpop.eup %3076  ;;  %v3950_v13 = vmul.f32 %v3075_v2, %v3848_v8  ;;  %3096 = vtanh.f32 %v840_v4  ;;  %1144 = vadd.xlane.f32.xlu1 %v1143_v12  ;;  %v1107_v2 = vmul.f32 %v3909_v36, %v3848_v8 }
 0x1b8   : > { %v3079_v15 = vpop.eup %3078  ;;  %v3955_v17 = vmul.f32 %v3077_v10, %v3848_v8  ;;  %3098 = vtanh.f32 %v2844_v0  ;;  %v2802_v24 = vpop.f32.mrb[26].mxu0  ;;  %v1245_v0 = vsel %vm1118_vm3, %v1104_v52, 0.0  ;;  %v1105_v10 = vmul.f32 %v3899_v26, %v3848_v8 }
 0x1b9   : > { %v3081_v20 = vpop.eup %3080  ;;  %v3961_v22 = vmul.f32 %v3079_v15, %v3848_v8  ;;  %3100 = vtanh.f32 %v990_v7  ;;  %v850_v11 = vpop.f32.mrb[27].mxu0  ;;  %v1158_v7 = vsel %vm1118_vm3, %v1075_v59, 0.0  ;;  %v1254_v15 = vsel %vm1118_vm3, %v1107_v2, 0.0 }
 0x1ba   : > { %v3083_v25 = vpop.eup %3082  ;;  %v3964_v27 = vmul.f32 %v3081_v20, %v3848_v8  ;;  %3102 = vtanh.f32 %v2802_v24  ;;  %1153 = vadd.xlane.f32.xlu0 %v1152_v21  ;;  %v1248_v5 = vsel %vm1118_vm3, %v1105_v10, 0.0  ;;  %v1164_v26 = vsel %vm1118_vm3, %v1077_v16, 0.0 }
 0x1bb   : > { %v3085_v28 = vpop.eup %3084  ;;  %3104 = vtanh.f32 %v850_v11  ;;  %v3968_v31 = vmul.f32 %v3083_v25, %v3848_v8  ;;  %1234 = vadd.xlane.f32.xlu1 %v1233_v29  ;;  %v1170_v25 = vsel %vm1118_vm3, %v3921_v47, 0.0  ;;  %v1167_v11 = vsel %vm1118_vm3, %v3926_v46, 0.0 }
 0x1bc   : > { %v3087_v32 = vpop.eup %3086  ;;  %3106 = vtanh.f32 %v3876_v1  ;;  %v3973_v33 = vmul.f32 %v3085_v28, %v3848_v8  ;;  %v2805_v41 = vpop.f32.mrb[28].mxu0  ;;  %v1266_v28 = vsel %vm1118_vm3, %v3940_v62, 0.0  ;;  %v1257_v29 = vsel %vm1118_vm3, %v3935_v53, 0.0 }
 0x1bd   : > { %v3089_v34 = vpop.eup %3088  ;;  %v3981_v42 = vmul.f32 %v3087_v32, %v3848_v8  ;;  %3108 = vtanh.f32 %v2805_v41  ;;  %v860_v44 = vpop.f32.mrb[29].mxu0  ;;  %v1176_v37 = vsel %vm1118_vm3, %v3950_v13, 0.0  ;;  %v1173_v47 = vsel %vm1118_vm3, %v3955_v17, 0.0 }
 0x1be   : > { %v3091_v43 = vpop.eup %3090  ;;  %v3984_v1 = vmul.f32 %v3089_v34, %v3848_v8  ;;  %3110 = vtanh.f32 %v860_v44  ;;  %1243 = vadd.xlane.f32.xlu0 %v1242_v35  ;;  %v1182_v46 = vsel %vm1118_vm3, %v3961_v22, 0.0  ;;  %v1272_v53 = vsel %vm1118_vm3, %v3968_v31, 0.0 }
 0x1bf   : > { %v3093_v45 = vpop.eup %3092  ;;  %v3987_v48 = vmul.f32 %v3091_v43, %v3848_v8  ;;  %1150 = vadd.xlane.f32.xlu1 %v1149_v14  ;;  %v1269_v62 = vsel %vm1118_vm3, %v3973_v33, 0.0  ;;  %v1278_v35 = vsel %vm1118_vm3, %v3981_v42, 0.0  ;;  %v1263_v39 = vsel %vm1118_vm3, %v3944_v9, 0.0 }
 0x1c0   : > { %v3095_v49 = vpop.eup %3094  ;;  %v3990_v18 = vmul.f32 %v3093_v45, %v3848_v8  ;;  %v1275_v13 = vsel %vm1118_vm3, %v3984_v1, 0.0 }
 0x1c1   : > { %v3097_v23 = vpop.eup %3096  ;;  %v1087_v54 = vmul.f32 %v3095_v49, %v3848_v8  ;;  %v1188_v17 = vsel %vm1118_vm3, %v3987_v48, 0.0 }
 0x1c2   : > { %v3099_v55 = vpop.eup %3098  ;;  %v3998_v56 = vmul.f32 %v3097_v23, %v3848_v8  ;;  %1156 = vadd.xlane.f32.xlu0 %v1155_v51 }
 0x1c3   : > { %v3101_v57 = vpop.eup %3100  ;;  %v4003_v60 = vmul.f32 %v3099_v55, %v3848_v8  ;;  %1240 = vadd.xlane.f32.xlu1 %v1239_v50  ;;  %v1194_v22 = vsel %vm1118_vm3, %v1087_v54, 0.0 }
 0x1c4   : > { %v3103_v61 = vpop.eup %3102  ;;  %v4006_v63 = vmul.f32 %v3101_v57, %v3848_v8  ;;  %v1191_v32 = vsel %vm1118_vm3, %v3998_v56, 0.0 }
 0x1c5   : > { %v3105_v30 = vpop.eup %3104  ;;  %v1089_v3 = vmul.f32 %v3103_v61, %v3848_v8  ;;  %v1284_v41 = vsel %vm1118_vm3, %v4003_v60, 0.0 }
 0x1c6   : > { %v3107_v4 = vpop.eup %3106  ;;  %v1088_v19 = vmul.f32 %v3105_v30, %v3848_v8  ;;  %1246 = vadd.xlane.f32.xlu0 %v1245_v0  ;;  %v1281_v38 = vsel %vm1118_vm3, %v4006_v63, 0.0 }
 0x1c7   : > { %v3109_v12 = vpop.eup %3108  ;;  %1159 = vadd.xlane.f32.xlu1 %v1158_v7  ;;  %v1076_v36 = vmul.f32 %v3107_v4, %v3848_v8  ;;  %v1200_v31 = vsel %vm1118_vm3, %v1089_v3, 0.0 }
 0x1c8   : > { %v3111_v6 = vpop.eup %3110  ;;  %v1091_v20 = vmul.f32 %v3109_v12, %v3848_v8  ;;  %v1197_v33 = vsel %vm1118_vm3, %v1088_v19, 0.0 }
 0x1c9   : > { %v1090_v21 = vmul.f32 %v3111_v6, %v3848_v8  ;;  %v1161_v24 = vsel %vm1118_vm3, %v1076_v36, 0.0  ;;  %v1260_v8 = vsel %vm1118_vm3, %v3932_v58, 0.0  ;;  %v1179_v58 = vsel %vm1118_vm3, %v3964_v27, 0.0 }
 0x1ca   : > { %1255 = vadd.xlane.f32.xlu0 %v1254_v15  ;;  %v1185_v27 = vsel %vm1118_vm3, %v3990_v18, 0.0  ;;  %v1206_v14 = vsel %vm1118_vm3, %v1091_v20, 0.0  ;;  %v1287_v36 = vlaneseq }
 0x1cb   : > { %1249 = vadd.xlane.f32.xlu1 %v1248_v5  ;;  %v1203_v34 = vsel %vm1118_vm3, %v1090_v21, 0.0 }
 0x1cc   : > { %v4136_v5 = vand.u32 127, %v1287_v36 }
 0x1ce   : > { %1162 = vadd.xlane.f32.xlu0 %v1161_v24  ;;  %vm1289_vm2 = vcmp.lt.s32.totalorder %v4136_v5, 49 }
 0x1cf   : > { %1165 = vadd.xlane.f32.xlu1 %v1164_v26 }
 0x1d2   : > { %1252 = vadd.xlane.f32.xlu0 %v1251_v40  ;;  %v1350_v40 = vadd.s32 4294967288, %v4136_v5 }
 0x1d3   : > { %1171 = vadd.xlane.f32.xlu1 %v1170_v25  ;;  %v4142_v25 = vshrl.u32 %v1287_v36, 7 }
 0x1d6   : > { %1168 = vadd.xlane.f32.xlu0 %v1167_v11 }
 0x1d7   : > { %1261 = vadd.xlane.f32.xlu1 %v1260_v8 }
 0x1da   : > { %1258 = vadd.xlane.f32.xlu0 %v1257_v29  ;;  %v4152_v29 = vsub.s32 %v4136_v5, %v4142_v25 }
 0x1db   : > { %1267 = vadd.xlane.f32.xlu1 %v1266_v28  ;;  %v1357_v28 = vadd.s32 4294967280, %v4136_v5 }
 0x1de   : > { %1177 = vadd.xlane.f32.xlu0 %v1176_v37  ;;  %v4155_v37 = vsub.s32 %v1350_v40, %v4142_v25 }
 0x1df   : > { %1174 = vadd.xlane.f32.xlu1 %v1173_v47 }
 0x1e2   : > { %1180 = vadd.xlane.f32.xlu0 %v1179_v58  ;;  %v4162_v58 = vsub.s32 %v1357_v28, %v4142_v25 }
 0x1e3   : > { %1183 = vadd.xlane.f32.xlu1 %v1182_v46 }
 0x1e6   : > { %1270 = vadd.xlane.f32.xlu0 %v1269_v62 }
 0x1e7   : > { %1273 = vadd.xlane.f32.xlu1 %v1272_v53  ;;  %v1364_v53 = vadd.s32 4294967272, %v4136_v5 }
 0x1ea   : > { %1189 = vadd.xlane.f32.xlu0 %v1188_v17 }
 0x1eb   : > { %1276 = vadd.xlane.f32.xlu1 %v1275_v13  ;;  %v1371_v13 = vadd.s32 4294967264, %v4136_v5 }
 0x1ee   : > { %1186 = vadd.xlane.f32.xlu0 %v1185_v27  ;;  %v1378_v27 = vadd.s32 4294967256, %v4136_v5 }
 0x1ef   : > { %1195 = vadd.xlane.f32.xlu1 %v1194_v22 }
 0x1f2   : > { %1192 = vadd.xlane.f32.xlu0 %v1191_v32 }
 0x1f3   : > { %1201 = vadd.xlane.f32.xlu1 %v1200_v31 }
 0x1f6   : > { %1207 = vadd.xlane.f32.xlu0 %v1206_v14  ;;  %v1385_v14 = vadd.s32 4294967248, %v4136_v5 }
 0x1f7   : > { %1198 = vadd.xlane.f32.xlu1 %v1197_v33  ;;  %v4177_v33 = vsub.s32 %v1364_v53, %v4142_v25 }
 0x1f8   : > { %v4200_v28 = vsub.s32 %v1385_v14, %v4142_v25 }
 0x1fa   : > { %1279 = vadd.xlane.f32.xlu0 %v1278_v35  ;;  %v4181_v35 = vsub.s32 %v1371_v13, %v4142_v25 }
 0x1fb   : > { %1204 = vadd.xlane.f32.xlu1 %v1203_v34 }
 0x1fe   : > { %1282 = vadd.xlane.f32.xlu0 %v1281_v38 }
 0x1ff   : > { %1264 = vadd.xlane.f32.xlu1 %v1263_v39 }
 0x203   : > { %1285 = vadd.xlane.f32.xlu1 %v1284_v41 }
 0x21f   : > { %v4070_v43 = vpop.xlane.xlu0 %1123 }
 0x220   : > { %v1354_v22 = vrot.slane %v4070_v43, %v4155_v37  ;;  %v4189_v43 = vsub.s32 %v1378_v27, %v4142_v25 }
 0x223   : > { %v4072_v1 = vpop.xlane.xlu1 %1210  ;;  %v4074_v44 = vpop.xlane.xlu0 %1213 }
 0x227   : > { %v1121_v42 = vpop.xlane.xlu0 %1120 }
 0x228   : > { %v4076_v45 = vpop.xlane.xlu1 %1135  ;;  %v1349_v62 = vrot.slane %v1121_v42, %v4152_v29 }
 0x22a   : > { %v1356_v34 = vsel %vm1355_vm4, %v1354_v22, %v1349_v62  ;;  %v1382_v22 = vrot.slane %v4076_v45, %v4189_v43 }
 0x22b   : > { %v4078_v48 = vpop.xlane.xlu0 %1129 }
 0x22c   : > { %v4080_v49 = vpop.xlane.xlu1 %1132  ;;  %v1368_v42 = vrot.slane %v4078_v48, %v4177_v33 }
 0x22f   : > { %v4082_v9 = vpop.xlane.xlu0 %1219 }
 0x230   : > { %v4084_v18 = vpop.xlane.xlu1 %1141 }
 0x233   : > { %v1127_v23 = vpop.xlane.xlu0 %1126 }
 0x234   : > { %v4086_v50 = vpop.xlane.xlu1 %1231  ;;  %v1361_v17 = vrot.slane %v1127_v23, %v4162_v58 }
 0x236   : > { %v1363_v39 = vsel %vm1362_vm5, %v1361_v17, %v1356_v34  ;;  %v1506_v17 = vrot.slane %v4072_v1, %v4162_v58 }
 0x237   : > { %v4088_v51 = vpop.xlane.xlu0 %1216  ;;  %v1370_v53 = vsel %vm1369_vm6, %v1368_v42, %v1363_v39 }
 0x238   : > { %v4090_v52 = vpop.xlane.xlu1 %1228 }
 0x239   : > { %v1535_v23 = vrot.slane %v4090_v52, %v4155_v37  ;;  %v1540_v52 = vrot.slane %v4086_v50, %v4162_v58 }
 0x23b   : > { %v4092_v54 = vpop.xlane.xlu0 %1225 }
 0x23c   : > { %v4094_v55 = vpop.xlane.xlu1 %1147  ;;  %v1531_v38 = vrot.slane %v4092_v54, %v4152_v29  ;;  %v1395_v54 = vrot.slane %v4084_v18, %v4152_v29 }
 0x23d   : > { %v1404_v50 = vrot.slane %v4094_v55, %v4162_v58 }
 0x23e   : > { %v1536_v48 = vsel %vm1355_vm4, %v1535_v23, %v1531_v38 }
 0x23f   : > { %v4096_v56 = vpop.xlane.xlu0 %1222  ;;  %v1541_v38 = vsel %vm1362_vm5, %v1540_v52, %v1536_v48 }
 0x240   : > { %v4098_v57 = vpop.xlane.xlu1 %1237 }
 0x241   : > { %v1550_v45 = vrot.slane %v4098_v57, %v4181_v35 }
 0x243   : > { %v4100_v59 = vpop.xlane.xlu0 %1138 }
 0x244   : > { %v4102_v60 = vpop.xlane.xlu1 %1144  ;;  %v1389_v55 = vrot.slane %v4100_v59, %v4200_v28 }
 0x245   : > { %v1399_v41 = vrot.slane %v4102_v60, %v4155_v37  ;;  %v1375_v60 = vrot.slane %v4080_v49, %v4181_v35  ;;  %v1511_v49 = vrot.slane %v4074_v44, %v4177_v33 }
 0x247   : > { %v4106_v63 = vpop.xlane.xlu0 %1153  ;;  %v1400_v62 = vsel %vm1355_vm4, %v1399_v41, %v1395_v54  ;;  %v1377_v34 = vsel %vm1376_vm7, %v1375_v60, %v1370_v53 }
 0x248   : > { %v4104_v61 = vpop.xlane.xlu1 %1234  ;;  %v1405_v39 = vsel %vm1362_vm5, %v1404_v50, %v1400_v62 }
 0x249   : > { %v1545_v18 = vrot.slane %v4104_v61, %v4177_v33  ;;  %v1521_v61 = vrot.slane %v4082_v9, %v4189_v43 }
 0x24b   : > { %v4108_v30 = vpop.xlane.xlu0 %1243  ;;  %v1546_v42 = vsel %vm1369_vm6, %v1545_v18, %v1541_v38 }
 0x24c   : > { %v4110_v0 = vpop.xlane.xlu1 %1150  ;;  %v1560_v50 = vrot.slane %v4108_v30, %v4200_v28 }
 0x24d   : > { %v1409_v13 = vrot.slane %v4110_v0, %v4177_v33  ;;  %v1516_v0 = vrot.slane %v4088_v51, %v4181_v35 }
 0x24f   : > { %v4114_v3 = vpop.xlane.xlu0 %1156  ;;  %v1410_v23 = vsel %vm1369_vm6, %v1409_v13, %v1405_v39 }
 0x250   : > { %v4112_v2 = vpop.xlane.xlu1 %1240  ;;  %v1419_v59 = vrot.slane %v4114_v3, %v4189_v43 }
 0x251   : > { %v1555_v57 = vrot.slane %v4112_v2, %v4189_v43  ;;  %v1414_v2 = vrot.slane %v4106_v63, %v4181_v35 }
 0x253   : > { %v4118_v19 = vpop.xlane.xlu0 %1246 }
 0x254   : > { %v4116_v4 = vpop.xlane.xlu1 %1159 }
 0x255   : > { %v1424_v3 = vrot.slane %v4116_v4, %v4200_v28 }
 0x257   : > { %v4122_v10 = vpop.xlane.xlu0 %1255 }
 0x258   : > { %v4120_v7 = vpop.xlane.xlu1 %1249 }
 0x25b   : > { %v4126_v6 = vpop.xlane.xlu0 %1162 }
 0x25c   : > { %v4124_v12 = vpop.xlane.xlu1 %1165  ;;  %v1429_v60 = vrot.slane %v4126_v6, %v4152_v29  ;;  %v1384_v6 = vsel %vm1383_vm8, %v1382_v22, %v1377_v34 }
 0x25d   : > { %v1433_v54 = vrot.slane %v4124_v12, %v4155_v37  ;;  %v1526_v12 = vrot.slane %v4096_v56, %v4200_v28  ;;  %v1391_v18 = vsel %vm1390_vm9, %v1389_v55, %v1384_v6 }
 0x25f   : > { %v4128_v15 = vpop.xlane.xlu0 %1252  ;;  %v1434_v22 = vsel %vm1355_vm4, %v1433_v54, %v1429_v60  ;;  %v1565_v54 = vrot.slane %v4118_v19, %v4152_v29 }
 0x260   : > { %v4130_v16 = vpop.xlane.xlu1 %1171 }
 0x263   : > { %v4134_v21 = vpop.xlane.xlu0 %1168 }
 0x264   : > { %v4132_v20 = vpop.xlane.xlu1 %1261  ;;  %v1438_v53 = vrot.slane %v4134_v21, %v4162_v58  ;;  %v1551_v21 = vsel %vm1376_vm7, %v1550_v45, %v1546_v42  ;;  %v1569_v42 = vrot.slane %v4120_v7, %v4155_v37 }
 0x265   : > { %v1556_v34 = vsel %vm1383_vm8, %v1555_v57, %v1551_v21 }
 0x266   : > { %v1439_v38 = vsel %vm1362_vm5, %v1438_v53, %v1434_v22  ;;  %v1561_v51 = vsel %vm1390_vm9, %v1560_v50, %v1556_v34 }
 0x267   : > { %v4140_v24 = vpop.xlane.xlu0 %1258 }
 0x268   : > { %v4138_v26 = vpop.xlane.xlu1 %1267 }
 0x26b   : > { %v4145_v8 = vpop.xlane.xlu0 %1177 }
 0x26c   : > { %v4147_v11 = vpop.xlane.xlu1 %1174  ;;  %v1453_v7 = vrot.slane %v4145_v8, %v4189_v43 }
 0x26d   : > { %v1448_v45 = vrot.slane %v4147_v11, %v4181_v35  ;;  %v1574_v11 = vrot.slane %v4128_v15, %v4162_v58 }
 0x26f   : > { %v4159_v46 = vpop.xlane.xlu0 %1180 }
 0x270   : > { %v4157_v47 = vpop.xlane.xlu1 %1183 }
 0x271   : > { %v1463_v48 = vrot.slane %v4157_v47, %v4152_v29 }
 0x273   : > { %v4173_v32 = vpop.xlane.xlu0 %1270 }
 0x274   : > { %v4171_v31 = vpop.xlane.xlu1 %1273 }
 0x277   : > { %v1190_v40 = vpop.xlane.xlu0 %1189 }
 0x278   : > { %v4195_v36 = vpop.xlane.xlu1 %1276  ;;  %v1472_v63 = vrot.slane %v1190_v40, %v4162_v58  ;;  %v1443_v40 = vrot.slane %v4130_v16, %v4177_v33 }
 0x27b   : > { %v1187_v27 = vpop.xlane.xlu0 %1186 }
 0x27c   : > { %v4221_v14 = vpop.xlane.xlu1 %1195  ;;  %v1467_v41 = vrot.slane %v1187_v27, %v4155_v37  ;;  %v1415_v27 = vsel %vm1376_vm7, %v1414_v2, %v1410_v23  ;;  %v1570_v2 = vsel %vm1355_vm4, %v1569_v42, %v1565_v54 }
 0x27d   : > { %v1420_v4 = vsel %vm1383_vm8, %v1419_v59, %v1415_v27  ;;  %v1444_v59 = vsel %vm1369_vm6, %v1443_v40, %v1439_v38  ;;  %v1482_v16 = vrot.slane %v4221_v14, %v4181_v35  ;;  %v1579_v14 = vrot.slane %v4122_v10, %v4177_v33 }
 0x27e   : > { %v1468_v47 = vsel %vm1355_vm4, %v1467_v41, %v1463_v48  ;;  %v1425_v41 = vsel %vm1390_vm9, %v1424_v3, %v1420_v4  ;;  %v1449_v15 = vsel %vm1376_vm7, %v1448_v45, %v1444_v59  ;;  %v1458_v48 = vrot.slane %v4159_v46, %v4200_v28 }
 0x27f   : > { %v1193_v52 = vpop.xlane.xlu0 %1192  ;;  %v1473_v23 = vsel %vm1362_vm5, %v1472_v63, %v1468_v47  ;;  %v1631_v19 = vsel %vm1630_vm10, %v1425_v41, %v1391_v18  ;;  %v1575_v21 = vsel %vm1362_vm5, %v1574_v11, %v1570_v2  ;;  %v1599_v46 = vrot.slane %v4138_v26, %v4152_v29 }
 0x280   : > { %v4249_v62 = vpop.xlane.xlu1 %1201  ;;  %v1477_v13 = vrot.slane %v1193_v52, %v4177_v33  ;;  %v1603_v52 = vrot.slane %v4173_v32, %v4155_v37  ;;  %v1454_v47 = vsel %vm1383_vm8, %v1453_v7, %v1449_v15  ;;  %v1608_v10 = vrot.slane %v4171_v31, %v4162_v58 }
 0x281   : > { %v1459_v22 = vsel %vm1390_vm9, %v1458_v48, %v1454_v47  ;;  %v1613_v26 = vrot.slane %v4195_v36, %v4177_v33  ;;  %v1580_v31 = vsel %vm1369_vm6, %v1579_v14, %v1575_v21  ;;  %v4923_v59 = vsub.s32 0, %v4142_v25 }
 0x282   : > { %v1478_v60 = vsel %vm1369_vm6, %v1477_v13, %v1473_v23  ;;  %v1492_v13 = vrot.slane %v4249_v62, %v4200_v28  ;;  %v1604_v63 = vsel %vm1355_vm4, %v1603_v52, %v1599_v46  ;;  %v4924_v15 = vsub.s32 1, %v4142_v25 }
 0x283   : > { %v1208_v39 = vpop.xlane.xlu0 %1207  ;;  %v1483_v3 = vsel %vm1376_vm7, %v1482_v16, %v1478_v60  ;;  %v1609_v44 = vsel %vm1362_vm5, %v1608_v10, %v1604_v63  ;;  %v4922_v48 = vsub.s32 2, %v4142_v25  ;;  %v1945_v14 = vsub.s32 4, %v4142_v25  ;;  %v4432_v10 = vld [vmem:[#allocation2] sm:$0xff]  ;;  %v4440_v63 = vld [vmem:[#allocation2 + $0x38] sm:$0xff] }
 0x284   : > { %v1199_v55 = vpop.xlane.xlu1 %1198  ;;  %v1501_v53 = vrot.slane %v1208_v39, %v4155_v37  ;;  %v1584_v37 = vrot.slane %v4140_v24, %v4181_v35  ;;  %v1633_v39 = vsel %vm1632_vm11, %v1459_v22, %v1631_v19  ;;  %v2007_v46 = vsub.s32 6, %v4142_v25 }
 0x285   : > { %v1487_v57 = vrot.slane %v1199_v55, %v4189_v43  ;;  %v1589_v55 = vrot.slane %v4132_v20, %v4189_v43 }
 0x286   : > { %v1585_v36 = vsel %vm1376_vm7, %v1584_v37, %v1580_v31 }
 0x287   : > { %v1280_v6 = vpop.xlane.xlu0 %1279  ;;  %v1488_v32 = vsel %vm1383_vm8, %v1487_v57, %v1483_v3  ;;  %v1590_v9 = vsel %vm1383_vm8, %v1589_v55, %v1585_v36 }
 0x288   : > { %v1205_v8 = vpop.xlane.xlu1 %1204  ;;  %v1493_v62 = vsel %vm1390_vm9, %v1492_v13, %v1488_v32  ;;  %v1618_v38 = vrot.slane %v1280_v6, %v4181_v35  ;;  %v1614_v35 = vsel %vm1369_vm6, %v1613_v26, %v1609_v44  ;;  %v2038_v32 = vsub.s32 7, %v4142_v25  ;;  %v4468_v44 = vld [vmem:[#allocation2 + $0xa8] sm:$0xff] }
 0x289   : > { %v1497_v18 = vrot.slane %v1205_v8, %v4152_v29  ;;  %v4921_v8 = vsub.s32 3, %v4142_v25  ;;  %v1659_v13 = vsel %vm355_vm1, %v4432_v10, 0.0  ;;  %v1678_v26 = vsel %vm355_vm1, %v4440_v63, 0.0 }
 0x28a   : > { %v1619_v41 = vsel %vm1376_vm7, %v1618_v38, %v1614_v35 }
 0x28b   : > { %v1502_v27 = vsel %vm1355_vm4, %v1501_v53, %v1497_v18  ;;  %v1283_v29 = vpop.xlane.xlu0 %1282  ;;  %vm1646_vm4 = vcmask 457728   ;;  %v1976_v18 = vsub.s32 5, %v4142_v25 }
 0x28c   : > { %v1507_v24 = vsel %vm1362_vm5, %v1506_v17, %v1502_v27  ;;  %v1265_v4 = vpop.xlane.xlu1 %1264  ;;  %v1623_v58 = vrot.slane %v1283_v29, %v4189_v43  ;;  %v4436_v27 = vld [vmem:[#allocation2 + $0x8] sm:$0xff]  ;;  %vm2466_vm5 = vcmask 982016  }
 0x28d   : > { %v1512_v45 = vsel %vm1369_vm6, %v1511_v49, %v1507_v24  ;;  %v1594_v17 = vrot.slane %v1265_v4, %v4200_v28  ;;  %v1635_v49 = vsel %vm1634_vm12, %v1493_v62, %v1633_v39  ;;  %v1660_v22 = vsel %vm355_vm1, %v4436_v27, 0.0  ;;  %v4444_v24 = vld [vmem:[#allocation2 + $0x40] sm:$0xff]  ;;  %v4450_v62 = vld [vmem:[#allocation2 + $0x70] sm:$0xff] }
 0x28e   : > { %v1517_v1 = vsel %vm1376_vm7, %v1516_v0, %v1512_v45  ;;  %v1679_v29 = vsel %vm355_vm1, %v4444_v24, 0.0  ;;  %v1661_v4 = vadd.f32 %v1660_v22, %v1659_v13  ;;  %v1697_v38 = vsel %vm355_vm1, %v4450_v62, 0.0  ;;  %v4454_v45 = vld [vmem:[#allocation2 + $0x78] sm:$0xff]  ;;  %v4520_v22 = vld [vmem:[#allocation2 + $0x150] sm:$0xff] }
 0x28f   : > { %v1522_v33 = vsel %vm1383_vm8, %v1521_v61, %v1517_v1  ;;  %v1624_v61 = vsel %vm1383_vm8, %v1623_v58, %v1619_v41  ;;  %v1595_v50 = vsel %vm1390_vm9, %v1594_v17, %v1590_v9  ;;  %v1680_v31 = vadd.f32 %v1679_v29, %v1678_v26  ;;  %v4458_v1 = vld [vmem:[#allocation2 + $0x10] sm:$0xff]  ;;  %v4462_v17 = vld [vmem:[#allocation2 + $0x48] sm:$0xff]  ;;  %v4480_v9 = vld [vmem:[#allocation2 + $0x18] sm:$0xff] }
 0x290   : > { %v1286_v0 = vpop.xlane.xlu1 %1285  ;;  %v1527_v20 = vsel %vm1390_vm9, %v1526_v12, %v1522_v33  ;;  %v1698_v36 = vsel %vm355_vm1, %v4454_v45, 0.0  ;;  %v1662_v58 = vsel %vm355_vm1, %v4458_v1, 0.0  ;;  %v1681_v55 = vsel %vm355_vm1, %v4462_v17, 0.0  ;;  %v4524_v29 = vld [vmem:[#allocation2 + $0x158] sm:$0xff] }
 0x291   : > { %v1628_v43 = vrot.slane %v1286_v0, %v4200_v28  ;;  %v1637_v30 = vsel %vm1636_vm13, %v1527_v20, %v1635_v49  ;;  %v1699_v39 = vadd.f32 %v1698_v36, %v1697_v38  ;;  %v1716_v33 = vsel %vm355_vm1, %v4468_v44, 0.0  ;;  %v4476_v20 = vld [vmem:[#allocation2 + $0x80] sm:$0xff]  ;;  %4971 = vst [vmem:[#allocation19_spill] sm:$0xff] %v4524_v29 }
 0x292   : > { %v1639_v34 = vsel %vm1638_vm14, %v1561_v51, %v1637_v30  ;;  %v4472_v51 = vld [vmem:[#allocation2 + $0xb0] sm:$0xff]  ;;  %v1663_v49 = vadd.f32 %v1662_v58, %v1661_v4  ;;  %v1682_v0 = vadd.f32 %v1681_v55, %v1680_v31  ;;  %v1700_v41 = vsel %vm355_vm1, %v4476_v20, 0.0  ;;  %v4528_v38 = vld [vmem:[#allocation2 + $0xc0] sm:$0xff] }
 0x293   : > { %v1629_v56 = vsel %vm1390_vm9, %v1628_v43, %v1624_v61  ;;  %v1641_v12 = vsel %vm1640_vm15, %v1595_v50, %v1639_v34  ;;  %v1717_v35 = vsel %vm355_vm1, %v4472_v51, 0.0  ;;  %v1664_v43 = vsel %vm355_vm1, %v4480_v9, 0.0  ;;  %v4484_v30 = vld [vmem:[#allocation2 + $0x50] sm:$0xff]  ;;  %v4488_v50 = vld [vmem:[#allocation2 + $0x118] sm:$0xff]  ;;  %4972 = vst [vmem:[#allocation20_spill] sm:$0xff] %v4528_v38 }
 0x294   : > { %v1643_v42 = vsel %vm1642_vm0, %v1629_v56, %v1641_v12  ;;  %v1683_v61 = vsel %vm355_vm1, %v4484_v30, 0.0  ;;  %v1754_v34 = vsel %vm355_vm1, %v4488_v50, 0.0  ;;  %v4492_v56 = vld [vmem:[#allocation2 + $0x120] sm:$0xff]  ;;  %v1773_v26 = vsel %vm355_vm1, %v4520_v22, 0.0 }
 0x295   : > { %v1645_v40 = vsel %vm1289_vm2, %v1643_v42, -1e+30  ;;  %v1755_v12 = vsel %vm355_vm1, %v4492_v56, 0.0  ;;  %v1718_v42 = vadd.f32 %v1717_v35, %v1716_v33  ;;  %v1774_v4 = vsel %vm355_vm1, %v4524_v29, 0.0  ;;  %v4536_v35 = vld [vmem:[#allocation2 + $0x28] sm:$0xff] }
 0x296   : > { %v1647_v23 = vsel %vm1646_vm4, %v1645_v40, -inf  ;;  %v1721_v36 = vsel %vm355_vm1, %v4528_v38, 0.0  ;;  %v4596_v38 = vld [vmem:[#allocation2 + $0x198] sm:$0xff] }
 0x297   : > { %1648 = vmax.xlane.f32.xlu0 %v1647_v23  ;;  %v4498_v23 = vld [vmem:[#allocation2 + $0xb8] sm:$0xff]  ;;  %4980 = vst [vmem:[#allocation28_spill] sm:$0xff] %v4596_v38  ;;  %v1795_v29 = vsel %vm355_vm1, %v4596_v38, 0.0  ;;  %v4616_v38 = vld [vmem:[#allocation2 + $0x140] sm:$0xff] }
 0x298   : > { %4985 = vst [vmem:[#allocation33_spill] sm:$0xff] %v4616_v38 }
 0x324   : > { %v1649_v28 = vpop.xlane.xlu0 %1648 }
 0x325   : > { %v1650_v54 = vsub.f32 %v1645_v40, %v1649_v28  ;;  %v1701_v40 = vadd.f32 %v1700_v41, %v1699_v39  ;;  %v1719_v28 = vsel %vm355_vm1, %v4498_v23, 0.0  ;;  %v4532_v39 = vld [vmem:[#allocation2 + $0x90] sm:$0xff] }
 0x326   : > { %v1720_v13 = vadd.f32 %v1719_v28, %v1718_v42  ;;  %v1704_v33 = vsel %vm355_vm1, %v4532_v39, 0.0  ;;  %v4540_v41 = vld [vmem:[#allocation2 + $0x130] sm:$0xff] }
 0x327   : > { %v1651_v11 = vmul.f32 1.442695, %v1650_v54  ;;  %v1665_v54 = vadd.f32 %v1664_v43, %v1663_v49  ;;  %v1668_v49 = vsel %vm355_vm1, %v4536_v35, 0.0  ;;  %4973 = vst [vmem:[#allocation21_spill] sm:$0xff] %v4540_v41  ;;  %v1759_v43 = vsel %vm355_vm1, %v4540_v41, 0.0 }
 0x328   : > { %v1722_v42 = vadd.f32 %v1721_v36, %v1720_v13  ;;  %v4566_v13 = vld [vmem:[#allocation2 + $0xc8] sm:$0xff] }
 0x329   : > { %3112 = vpow2.f32 %v1651_v11  ;;  %v1684_v11 = vadd.f32 %v1683_v61, %v1682_v0  ;;  %v4544_v61 = vld [vmem:[#allocation2 + $0x60] sm:$0xff]  ;;  %4976 = vst [vmem:[#allocation24_spill] sm:$0xff] %v4566_v13 }
 0x333   : > { %v3113_v60 = vpop.eup %3112 }
 0x334   : > { %v1653_v57 = vsel %vm1289_vm2, %v3113_v60, 0.0  ;;  %v4502_v60 = vld [vmem:[#allocation2 + $0x88] sm:$0xff] }
 0x335   : > { %v1654_v7 = vsel %vm1646_vm4, %v1653_v57, 0.0 }
 0x336   : > { %1655 = vadd.xlane.f32.xlu1 %v1654_v7  ;;  %v4506_v7 = vld [vmem:[#allocation2 + $0x20] sm:$0xff] }
 0x3c3   : > { %v1656_v5 = vpop.xlane.xlu1 %1655 }
 0x3c4   : > { %3114 = vrcp.f32 %v1656_v5  ;;  %v1666_v5 = vsel %vm355_vm1, %v4506_v7, 0.0 }
 0x3c5   : > { %v1667_v58 = vadd.f32 %v1666_v5, %v1665_v54  ;;  %v4552_v54 = vld [vmem:[#allocation2 + $0xe8] sm:$0xff] }
 0x3ce   : > { %v3115_v16 = vpop.eup %3114 }
 0x3cf   : > { %v4365_v53 = vmul.f32 %v3115_v16, %v1653_v57  ;;  %v1702_v57 = vsel %vm355_vm1, %v4502_v60, 0.0  ;;  %v1756_v16 = vadd.f32 %v1755_v12, %v1754_v34  ;;  %v1687_v34 = vsel %vm355_vm1, %v4544_v61, 0.0 }
 0x3d0   : > { %v1703_v31 = vadd.f32 %v1702_v57, %v1701_v40  ;;  %v1775_v12 = vadd.f32 %v1774_v4, %v1773_v26  ;;  %v4548_v40 = vld [vmem:[#allocation2 + $0xe0] sm:$0xff]  ;;  %v4558_v57 = vld [vmem:[#allocation2 + $0x188] sm:$0xff]  ;;  %v1723_v26 = vsel %vm355_vm1, %v4566_v13, 0.0  ;;  %v1669_v4 = vadd.f32 %v1668_v49, %v1667_v58  ;;  %v4590_v13 = vld [vmem:[#allocation2 + $0x138] sm:$0xff] }
 0x3d1   : > { %4969 = vst [vmem:[#allocation17_spill] sm:$0xff] %v4365_v53  ;;  %v4370_v19 = vrot.slane %v4365_v53, %v4923_v59  ;;  %v4379_v52 = vrot.slane %v4365_v53, %v4924_v15  ;;  %v4384_v6 = vrot.slane %v4365_v53, %v4922_v48  ;;  %v4394_v2 = vrot.slane %v4365_v53, %v4921_v8  ;;  %v4570_v8 = vld [vmem:[#allocation2 + $0x160] sm:$0xff]  ;;  %v4574_v59 = vld [vmem:[#allocation2 + $0x98] sm:$0xff] }
 0x3d2   : > { %v4402_v3 = vrot.slane %v4365_v53, %v1945_v14  ;;  %v4410_v21 = vrot.slane %v4365_v53, %v1976_v18  ;;  %v4418_v37 = vrot.slane %v4365_v53, %v2007_v46  ;;  %v4428_v47 = vrot.slane %v4365_v53, %v2038_v32  ;;  %v4510_v14 = vld [vmem:[#allocation2 + $0x58] sm:$0xff]  ;;  %v4514_v46 = vld [vmem:[#allocation2 + $0x128] sm:$0xff]  ;;  %4974 = vst [vmem:[#allocation22_spill] sm:$0xff] %v4558_v57  ;;  %v4582_v53 = vld [vmem:[#allocation2 + $0x30] sm:$0xff] }
 0x3d3   : > { %1828 = vbcast.lane.b32.xlu1 %v4370_v19, 264  ;;  %1824 = vbcast.lane.b32.xlu0 %v4370_v19, 256  ;;  %v1685_v18 = vsel %vm355_vm1, %v4510_v14, 0.0  ;;  %4970 = vst [vmem:[#allocation18_spill] sm:$0xff] %v4514_v46  ;;  %v1757_v32 = vsel %vm355_vm1, %v4514_v46, 0.0  ;;  %v1735_v28 = vsel %vm355_vm1, %v4548_v40, 0.0 }
 0x3d4   : > { %v1686_v55 = vadd.f32 %v1685_v18, %v1684_v11  ;;  %v1758_v0 = vadd.f32 %v1757_v32, %v1756_v16  ;;  %v1736_v11 = vsel %vm355_vm1, %v4552_v54, 0.0  ;;  %v1792_v5 = vsel %vm355_vm1, %v4558_v57, 0.0  ;;  %v4562_v18 = vld [vmem:[#allocation2 + $0x190] sm:$0xff]  ;;  %4977 = vst [vmem:[#allocation25_spill] sm:$0xff] %v4570_v8  ;;  %4978 = vst [vmem:[#allocation26_spill] sm:$0xff] %v4582_v53 }
 0x3d5   : > { %v1705_v16 = vadd.f32 %v1704_v33, %v1703_v31  ;;  %4975 = vst [vmem:[#allocation23_spill] sm:$0xff] %v4562_v18  ;;  %v1793_v32 = vsel %vm355_vm1, %v4562_v18, 0.0  ;;  %v1776_v48 = vsel %vm355_vm1, %v4570_v8, 0.0  ;;  %v1706_v31 = vsel %vm355_vm1, %v4574_v59, 0.0  ;;  %v4578_v33 = vld [vmem:[#allocation2 + $0xf0] sm:$0xff]  ;;  %4979 = vst [vmem:[#allocation27_spill] sm:$0xff] %v4590_v13 }
 0x3d6   : > { %v1688_v36 = vadd.f32 %v1687_v34, %v1686_v55  ;;  %v1738_v15 = vsel %vm355_vm1, %v4578_v33, 0.0  ;;  %v1670_v58 = vsel %vm355_vm1, %v4582_v53, 0.0  ;;  %v4586_v55 = vld [vmem:[#allocation2 + $0x68] sm:$0xff]  ;;  %v1737_v34 = vadd.f32 %v1736_v11, %v1735_v28  ;;  %v4600_v28 = vld [vmem:[#allocation2 + $0xd0] sm:$0xff] }
 0x3d7   : > { %1855 = vbcast.lane.b32.xlu1 %v4379_v52, 256  ;;  %1886 = vbcast.lane.b32.xlu0 %v4384_v6, 256  ;;  %v1689_v49 = vsel %vm355_vm1, %v4586_v55, 0.0  ;;  %v1760_v8 = vadd.f32 %v1759_v43, %v1758_v0  ;;  %v1761_v41 = vsel %vm355_vm1, %v4590_v13, 0.0  ;;  %v1794_v18 = vadd.f32 %v1793_v32, %v1792_v5  ;;  %4981 = vst [vmem:[#allocation29_spill] sm:$0xff] %v4600_v28  ;;  %v4604_v5 = vld [vmem:[#allocation2 + $0x168] sm:$0xff] }
 0x3d8   : > { %v1724_v57 = vadd.f32 %v1723_v26, %v1722_v42  ;;  %v1777_v46 = vadd.f32 %v1776_v48, %v1775_v12  ;;  %v1707_v53 = vadd.f32 %v1706_v31, %v1705_v16  ;;  %v1725_v0 = vsel %vm355_vm1, %v4600_v28, 0.0  ;;  %4982 = vst [vmem:[#allocation30_spill] sm:$0xff] %v4604_v5  ;;  %v4608_v32 = vld [vmem:[#allocation2 + $0xa0] sm:$0xff]  ;;  %v4612_v12 = vld [vmem:[#allocation2 + $0xf8] sm:$0xff] }
 0x3d9   : > { %v1671_v43 = vadd.f32 %v1670_v58, %v1669_v4  ;;  %v1690_v11 = vadd.f32 %v1689_v49, %v1688_v36  ;;  %v1778_v42 = vsel %vm355_vm1, %v4604_v5, 0.0  ;;  %4983 = vst [vmem:[#allocation31_spill] sm:$0xff] %v4608_v32  ;;  %v1708_v48 = vsel %vm355_vm1, %v4608_v32, 0.0  ;;  %4984 = vst [vmem:[#allocation32_spill] sm:$0xff] %v4612_v12  ;;  %v4622_v13 = vld [vmem:[#allocation2 + $0x1a0] sm:$0xff] }
 0x3da   : > { %v1740_v16 = vsel %vm355_vm1, %v4612_v12, 0.0  ;;  %v1739_v26 = vadd.f32 %v1738_v15, %v1737_v34  ;;  %v1762_v31 = vadd.f32 %v1761_v41, %v1760_v8  ;;  %v1763_v4 = vsel %vm355_vm1, %v4616_v38, 0.0  ;;  %4986 = vst [vmem:[#allocation34_spill] sm:$0xff] %v4622_v13  ;;  %v4626_v15 = vld [vmem:[#allocation2 + $0xd8] sm:$0xff] }
 0x3db   : > { %1859 = vbcast.lane.b32.xlu1 %v4379_v52, 264  ;;  %1832 = vbcast.lane.b32.xlu0 %v4370_v19, 272  ;;  %v1796_v36 = vadd.f32 %v1795_v29, %v1794_v18  ;;  %v1726_v58 = vadd.f32 %v1725_v0, %v1724_v57  ;;  %v1779_v49 = vadd.f32 %v1778_v42, %v1777_v46  ;;  %v1797_v28 = vsel %vm355_vm1, %v4622_v13, 0.0  ;;  %v4630_v29 = vld [vmem:[#allocation2 + $0x170] sm:$0xff]  ;;  %v4634_v0 = vld [vmem:[#allocation2 + $0x100] sm:$0xff] }
 0x3dc   : > { %v1709_v5 = vadd.f32 %v1708_v48, %v1707_v53  ;;  %4987 = vst [vmem:[#allocation35_spill] sm:$0xff] %v4626_v15  ;;  %v1727_v8 = vsel %vm355_vm1, %v4626_v15, 0.0  ;;  %v1672_v41 = vrot.slane %v1671_v43, 4  ;;  %v1691_v34 = vrot.slane %v1690_v11, 4  ;;  %4988 = vst [vmem:[#allocation36_spill] sm:$0xff] %v4630_v29  ;;  %v2306_v46 = vld [vmem:[#allocation9 + $0x8] sm:$0xff] }
 0x3dd   : > { %v1780_v57 = vsel %vm355_vm1, %v4630_v29, 0.0  ;;  %v1741_v53 = vadd.f32 %v1740_v16, %v1739_v26  ;;  %4989 = vst [vmem:[#allocation37_spill] sm:$0xff] %v4634_v0  ;;  %v1742_v42 = vsel %vm355_vm1, %v4634_v0, 0.0  ;;  %v1764_v48 = vadd.f32 %v1763_v4, %v1762_v31  ;;  %v4640_v15 = vld [vmem:[#allocation2 + $0x148] sm:$0xff]  ;;  %v4648_v4 = vld [vmem:[#allocation2 + $0x178] sm:$0xff] }
 0x3de   : > { %v1798_v13 = vadd.f32 %v1797_v28, %v1796_v36  ;;  %v1728_v38 = vadd.f32 %v1727_v8, %v1726_v58  ;;  %4990 = vst [vmem:[#allocation38_spill] sm:$0xff] %v4640_v15  ;;  %v1765_v29 = vsel %vm355_vm1, %v4640_v15, 0.0  ;;  %v1781_v12 = vadd.f32 %v1780_v57, %v1779_v49  ;;  %v4644_v26 = vld [vmem:[#allocation2 + $0x1a8] sm:$0xff]  ;;  %4992 = vst [vmem:[#allocation40_spill] sm:$0xff] %v4648_v4 }
 0x3df   : > { %1890 = vbcast.lane.b32.xlu1 %v4384_v6, 264  ;;  %1917 = vbcast.lane.b32.xlu0 %v4394_v2, 256  ;;  %v1710_v16 = vrot.slane %v1709_v5, 4  ;;  %4991 = vst [vmem:[#allocation39_spill] sm:$0xff] %v4644_v26  ;;  %v1673_v31 = vadd.f32 %v1672_v41, %v1671_v43  ;;  %v1692_v28 = vadd.f32 %v1691_v34, %v1690_v11  ;;  %v4652_v58 = vld [vmem:[#allocation2 + $0x108] sm:$0xff]  ;;  %v4658_v41 = vld [vmem:[#allocation2 + $0x1b0] sm:$0xff] }
 0x3e0   : > { %v1743_v36 = vadd.f32 %v1742_v42, %v1741_v53  ;;  %4993 = vst [vmem:[#allocation41_spill] sm:$0xff] %v4652_v58  ;;  %v1744_v49 = vsel %vm355_vm1, %v4652_v58, 0.0  ;;  %v1766_v8 = vadd.f32 %v1765_v29, %v1764_v48  ;;  %4994 = vst [vmem:[#allocation42_spill] sm:$0xff] %v4658_v41  ;;  %v1801_v34 = vsel %vm355_vm1, %v4658_v41, 0.0  ;;  %v4662_v42 = vld [vmem:[#allocation2 + $0x180] sm:$0xff]  ;;  %v4666_v48 = vld [vmem:[#allocation2 + $0x110] sm:$0xff] }
 0x3e1   : > { %v1711_v11 = vadd.f32 %v1710_v16, %v1709_v5  ;;  %v1674_v53 = vrot.slane %v1673_v31, 2  ;;  %4995 = vst [vmem:[#allocation43_spill] sm:$0xff] %v4662_v42  ;;  %v1784_v29 = vsel %vm355_vm1, %v4662_v42, 0.0  ;;  %4996 = vst [vmem:[#allocation44_spill] sm:$0xff] %v4666_v48 }
 0x3e3   : > { %1863 = vbcast.lane.b32.xlu1 %v4379_v52, 272  ;;  %1894 = vbcast.lane.b32.xlu0 %v4384_v6, 272  ;;  %v1675_v42 = vadd.f32 %v1674_v53, %v1673_v31 }
 0x3e7   : > { %1921 = vbcast.lane.b32.xlu1 %v4394_v2, 264  ;;  %1952 = vbcast.lane.b32.xlu0 %v4402_v3, 264 }
 0x3eb   : > { %1948 = vbcast.lane.b32.xlu1 %v4402_v3, 256  ;;  %1867 = vbcast.lane.b32.xlu0 %v4379_v52, 280 }
 0x3ef   : > { %1836 = vbcast.lane.b32.xlu1 %v4370_v19, 280  ;;  %1979 = vbcast.lane.b32.xlu0 %v4410_v21, 256 }
 0x3f3   : > { %1925 = vbcast.lane.b32.xlu1 %v4394_v2, 272  ;;  %1898 = vbcast.lane.b32.xlu0 %v4384_v6, 280 }
 0x3f7   : > { %1983 = vbcast.lane.b32.xlu1 %v4410_v21, 264  ;;  %2010 = vbcast.lane.b32.xlu0 %v4418_v37, 256 }
 0x3fb   : > { %1956 = vbcast.lane.b32.xlu1 %v4402_v3, 272  ;;  %1840 = vbcast.lane.b32.xlu0 %v4370_v19, 288 }
 0x3ff   : > { %2014 = vbcast.lane.b32.xlu1 %v4418_v37, 264  ;;  %1929 = vbcast.lane.b32.xlu0 %v4394_v2, 280 }
 0x403   : > { %1871 = vbcast.lane.b32.xlu1 %v4379_v52, 288  ;;  %2041 = vbcast.lane.b32.xlu0 %v4428_v47, 256 }
 0x407   : > { %1987 = vbcast.lane.b32.xlu1 %v4410_v21, 272  ;;  %1902 = vbcast.lane.b32.xlu0 %v4384_v6, 288 }
 0x40b   : > { %2045 = vbcast.lane.b32.xlu1 %v4428_v47, 264  ;;  %2018 = vbcast.lane.b32.xlu0 %v4418_v37, 272 }
 0x40f   : > { %1960 = vbcast.lane.b32.xlu1 %v4402_v3, 280  ;;  %1875 = vbcast.lane.b32.xlu0 %v4379_v52, 296 }
 0x413   : > { %1844 = vbcast.lane.b32.xlu1 %v4370_v19, 296  ;;  %1991 = vbcast.lane.b32.xlu0 %v4410_v21, 280 }
 0x417   : > { %1933 = vbcast.lane.b32.xlu1 %v4394_v2, 288  ;;  %1906 = vbcast.lane.b32.xlu0 %v4384_v6, 296 }
 0x41b   : > { %2049 = vbcast.lane.b32.xlu1 %v4428_v47, 272  ;;  %2022 = vbcast.lane.b32.xlu0 %v4418_v37, 280 }
 0x41f   : > { %1964 = vbcast.lane.b32.xlu1 %v4402_v3, 288  ;;  %1879 = vbcast.lane.b32.xlu0 %v4379_v52, 304  ;;  %v2305_v52 = vld [vmem:[#allocation9] sm:$0xff] }
 0x420   : > { %v2880_v18 = vpack.c.bf16 %v2306_v46, %v2305_v52  ;;  %v1799_v52 = vsel %vm355_vm1, %v4644_v26, 0.0  ;;  %v1729_v46 = vrot.slane %v1728_v38, 4  ;;  %v4672_v26 = vld [vmem:[#allocation2 + $0x1b8] sm:$0xff] }
 0x421   : > { %v1800_v57 = vadd.f32 %v1799_v52, %v1798_v13  ;;  %v1745_v13 = vadd.f32 %v1744_v49, %v1743_v36  ;;  %v2307_v52 = vld [vmem:[#allocation9 + $0x10] sm:$0xff]  ;;  %4997 = vst [vmem:[#allocation45_spill] sm:$0xff] %v4672_v26  ;;  %v1803_v36 = vsel %vm355_vm1, %v4672_v26, 0.0 }
 0x422   : > { %2881 = vmatprep.subr.bf16.mxu1 %v2880_v18  ;;  %v1730_v5 = vadd.f32 %v1729_v46, %v1728_v38 }
 0x423   : > { %1848 = vbcast.lane.b32.xlu1 %v4370_v19, 304  ;;  %1995 = vbcast.lane.b32.xlu0 %v4410_v21, 288  ;;  %v1782_v19 = vsel %vm355_vm1, %v4648_v4, 0.0  ;;  %v1802_v16 = vadd.f32 %v1801_v34, %v1800_v57  ;;  %v1712_v4 = vrot.slane %v1711_v11, 2 }
 0x424   : > { %2883 = vmatpush3.bf16.msra.mxu1 %v2880_v18  ;;  %v1783_v43 = vadd.f32 %v1782_v19, %v1781_v12  ;;  %v1693_v18 = vrot.slane %v1692_v28, 2  ;;  %v1767_v12 = vrot.slane %v1766_v8, 4  ;;  %v2308_v19 = vld [vmem:[#allocation9 + $0x18] sm:$0xff]  ;;  %v1731_v57 = vrot.slane %v1730_v5, 2 }
 0x425   : > { %v2884_v49 = vpack.c.bf16 %v2308_v19, %v2307_v52  ;;  %v1804_v46 = vadd.f32 %v1803_v36, %v1802_v16  ;;  %v2309_v19 = vld [vmem:[#allocation9 + $0x20] sm:$0xff] }
 0x426   : > { %v1785_v41 = vadd.f32 %v1784_v29, %v1783_v43  ;;  %v1694_v15 = vadd.f32 %v1693_v18, %v1692_v28  ;;  %v1768_v38 = vadd.f32 %v1767_v12, %v1766_v8  ;;  %v1713_v43 = vadd.f32 %v1712_v4, %v1711_v11 }
 0x427   : > { %1937 = vbcast.lane.b32.xlu1 %v4394_v2, 296  ;;  %1910 = vbcast.lane.b32.xlu0 %v4384_v6, 304  ;;  %v1746_v6 = vsel %vm355_vm1, %v4666_v48, 0.0  ;;  %v1676_v29 = vrot.slane %v1675_v42, 1  ;;  %v1732_v26 = vadd.f32 %v1731_v57, %v1730_v5  ;;  %v1805_v52 = vrot.slane %v1804_v46, 4 }
 0x428   : > { %v1747_v48 = vadd.f32 %v1746_v6, %v1745_v13  ;;  %2885 = vmatprep.subr.bf16.mxu1 %v2884_v49  ;;  %v1786_v34 = vrot.slane %v1785_v41, 4  ;;  %v1695_v58 = vrot.slane %v1694_v15, 1  ;;  %v1769_v32 = vrot.slane %v1768_v38, 2 }
 0x429   : > { %2887 = vmatpush3.bf16.msra.mxu1 %v2884_v49  ;;  %v1714_v28 = vrot.slane %v1713_v43, 1  ;;  %v1677_v8 = vadd.f32 %v1676_v29, %v1675_v42  ;;  %v1733_v6 = vrot.slane %v1732_v26, 1  ;;  %v1806_v12 = vadd.f32 %v1805_v52, %v1804_v46  ;;  %v2311_v29 = vld [vmem:[#allocation9 + $0x30] sm:$0xff] }
 0x42a   : > { %v1748_v0 = vrot.slane %v1747_v48, 4  ;;  %v1787_v31 = vadd.f32 %v1786_v34, %v1785_v41  ;;  %v1696_v53 = vadd.f32 %v1695_v58, %v1694_v15  ;;  %v1770_v13 = vadd.f32 %v1769_v32, %v1768_v38 }
 0x42b   : > { %2053 = vbcast.lane.b32.xlu1 %v4428_v47, 280  ;;  %2026 = vbcast.lane.b32.xlu0 %v4418_v37, 288  ;;  %v1715_v11 = vadd.f32 %v1714_v28, %v1713_v43  ;;  %v1811_v5 = vmul.f32 0.020408163, %v1677_v8  ;;  %v1734_v49 = vadd.f32 %v1733_v6, %v1732_v26  ;;  %v1807_v42 = vrot.slane %v1806_v12, 2 }
 0x42c   : > { %v1749_v18 = vadd.f32 %v1748_v0, %v1747_v48  ;;  %v1788_v4 = vrot.slane %v1787_v31, 2  ;;  %v1812_v16 = vmul.f32 0.020408163, %v1696_v53  ;;  %v1771_v41 = vrot.slane %v1770_v13, 1 }
 0x42d   : > { %v1813_v15 = vmul.f32 0.020408163, %v1715_v11  ;;  %v1814_v38 = vmul.f32 0.020408163, %v1734_v49  ;;  %v1808_v57 = vadd.f32 %v1807_v42, %v1806_v12 }
 0x42e   : > { %v1789_v32 = vadd.f32 %v1788_v4, %v1787_v31  ;;  %v1772_v48 = vadd.f32 %v1771_v41, %v1770_v13  ;;  %v4698_v41 = vld [vmem:[#allocation11] sm:$0xf] }
 0x42f   : > { %1968 = vbcast.lane.b32.xlu1 %v4402_v3, 296  ;;  %1999 = vbcast.lane.b32.xlu0 %v4410_v21, 296  ;;  %v1809_v43 = vrot.slane %v1808_v57, 1 }
 0x430   : > { %v1790_v34 = vrot.slane %v1789_v32, 1  ;;  %v1816_v53 = vmul.f32 0.020408163, %v1772_v48 }
 0x431   : > { %v1810_v8 = vadd.f32 %v1809_v43, %v1808_v57 }
 0x432   : > { %v1791_v52 = vadd.f32 %v1790_v34, %v1789_v32 }
 0x433   : > { %1941 = vbcast.lane.b32.xlu1 %v4394_v2, 304  ;;  %1972 = vbcast.lane.b32.xlu0 %v4402_v3, 304  ;;  %v2310_v2 = vld [vmem:[#allocation9 + $0x28] sm:$0xff]  ;;  %v1750_v3 = vrot.slane %v1749_v18, 2  ;;  %v1818_v11 = vmul.f32 0.020408163, %v1810_v8 }
 0x434   : > { %v2888_v36 = vpack.c.bf16 %v2310_v2, %v2309_v19  ;;  %v1817_v13 = vmul.f32 0.020408163, %v1791_v52 }
 0x435   : > { %v1751_v0 = vadd.f32 %v1750_v3, %v1749_v18 }
 0x436   : > { %2889 = vmatprep.subr.bf16.mxu1 %v2888_v36 }
 0x437   : > { %2057 = vbcast.lane.b32.xlu1 %v4428_v47, 288  ;;  %2003 = vbcast.lane.b32.xlu0 %v4410_v21, 304  ;;  %v2283_v21 = vsel %vm1630_vm10, %v1812_v16, %v1811_v5  ;;  %v1752_v58 = vrot.slane %v1751_v0, 1 }
 0x438   : > { %2891 = vmatpush3.bf16.msra.mxu1 %v2888_v36  ;;  %v2284_v26 = vsel %vm1632_vm11, %v1813_v15, %v2283_v21 }
 0x439   : > { %v1753_v46 = vadd.f32 %v1752_v58, %v1751_v0  ;;  %v2285_v18 = vsel %vm1634_vm12, %v1814_v38, %v2284_v26 }
 0x43b   : > { %2030 = vbcast.lane.b32.xlu1 %v4418_v37, 296  ;;  %2034 = vbcast.lane.b32.xlu0 %v4418_v37, 304  ;;  %v2312_v37 = vld [vmem:[#allocation9 + $0x38] sm:$0xff]  ;;  %v1815_v31 = vmul.f32 0.020408163, %v1753_v46 }
 0x43c   : > { %v2892_v28 = vpack.c.bf16 %v2312_v37, %v2311_v29 }
 0x43d   : > { %v2286_v6 = vsel %vm1636_vm13, %v1815_v31, %v2285_v18 }
 0x43e   : > { %2893 = vmatprep.subr.bf16.mxu1 %v2892_v28  ;;  %v2287_v5 = vsel %vm1638_vm14, %v1816_v53, %v2286_v6 }
 0x43f   : > { %2061 = vbcast.lane.b32.xlu1 %v4428_v47, 296  ;;  %2895 = vmatpush3.bf16.msra.mxu1 %v2892_v28 }
 0x443   : > { %2065 = vbcast.lane.b32.xlu1 %v4428_v47, 304  ;;  %v2288_v47 = vsel %vm1640_vm15, %v1817_v13, %v2287_v5 }
 0x444   : > { %v2289_v2 = vsel %vm1642_vm0, %v1818_v11, %v2288_v47 }
 0x445   : > { %v1829_v12 = vpop.permute.xlu1 %1828  ;;  %v1825_v4 = vpop.permute.xlu0 %1824  ;;  %2861 = vmatprep.mubr.msk.f32.mxu1 %vm355_vm1, %v2289_v2 }
 0x446   : > { %v2068_v16 = vmul.f32 %v4436_v27, %v1829_v12  ;;  %v2067_v19 = vmul.f32 %v4432_v10, %v1825_v4  ;;  %v4998_v27 = vsub.s32 1, %v4142_v25 }
 0x448   : > { %v2124_v36 = vsel %vm355_vm1, %v2068_v16, 0.0  ;;  %v2123_v3 = vsel %vm355_vm1, %v2067_v19, 0.0  ;;  %v2401_v10 = vrot.slane %v4698_v41, %v4998_v27 }
 0x449   : > { %v2125_v49 = vadd.f32 %v2124_v36, %v2123_v3  ;;  %v1856_v42 = vpop.permute.xlu1 %1855  ;;  %v1887_v32 = vpop.permute.xlu0 %1886 }
 0x44a   : > { %2403 = vrot.lane.b32.xlu0 %v2401_v10, %s3408_s24  ;;  %v2074_v15 = vmul.f32 %v4440_v63, %v1856_v42  ;;  %v2081_v57 = vmul.f32 %v4450_v62, %v1887_v32 }
 0x44c   : > { %v2142_v38 = vsel %vm355_vm1, %v2074_v15, 0.0  ;;  %v2161_v52 = vsel %vm355_vm1, %v2081_v57, 0.0 }
 0x44d   : > { %v1860_v0 = vpop.permute.xlu1 %1859  ;;  %v1833_v21 = vpop.permute.xlu0 %1832 }
 0x44e   : > { %v2075_v58 = vmul.f32 %v4444_v24, %v1860_v0  ;;  %v2069_v48 = vmul.f32 %v4458_v1, %v1833_v21 }
 0x450   : > { %v2143_v26 = vsel %vm355_vm1, %v2075_v58, 0.0  ;;  %v2126_v46 = vsel %vm355_vm1, %v2069_v48, 0.0 }
 0x451   : > { %v2144_v34 = vadd.f32 %v2143_v26, %v2142_v38  ;;  %v2127_v43 = vadd.f32 %v2126_v46, %v2125_v49  ;;  %v1891_v29 = vpop.permute.xlu1 %1890  ;;  %v1918_v37 = vpop.permute.xlu0 %1917 }
 0x452   : > { %v2082_v63 = vmul.f32 %v4454_v45, %v1891_v29  ;;  %v2088_v53 = vmul.f32 %v4468_v44, %v1918_v37 }
 0x454   : > { %v2162_v24 = vsel %vm355_vm1, %v2082_v63, 0.0  ;;  %v2180_v5 = vsel %vm355_vm1, %v2088_v53, 0.0 }
 0x455   : > { %v2163_v31 = vadd.f32 %v2162_v24, %v2161_v52  ;;  %v1864_v1 = vpop.permute.xlu1 %1863  ;;  %v1895_v28 = vpop.permute.xlu0 %1894 }
 0x456   : > { %v2076_v8 = vmul.f32 %v4462_v17, %v1864_v1  ;;  %v2083_v62 = vmul.f32 %v4476_v20, %v1895_v28 }
 0x458   : > { %v2145_v18 = vsel %vm355_vm1, %v2076_v8, 0.0  ;;  %v2164_v13 = vsel %vm355_vm1, %v2083_v62, 0.0 }
 0x459   : > { %v2146_v6 = vadd.f32 %v2145_v18, %v2144_v34  ;;  %v4718_v12 = vadd.f32 %v2164_v13, %v2163_v31  ;;  %v1922_v45 = vpop.permute.xlu1 %1921  ;;  %v1953_v4 = vpop.permute.xlu0 %1952 }
 0x45a   : > { %v2089_v11 = vmul.f32 %v4472_v51, %v1922_v45  ;;  %v2096_v17 = vmul.f32 %v4552_v54, %v1953_v4 }
 0x45c   : > { %v2181_v16 = vsel %vm355_vm1, %v2089_v11, 0.0  ;;  %v2200_v36 = vsel %vm355_vm1, %v2096_v17, 0.0 }
 0x45d   : > { %v2182_v20 = vadd.f32 %v2181_v16, %v2180_v5  ;;  %v1949_v19 = vpop.permute.xlu1 %1948  ;;  %v1868_v44 = vpop.permute.xlu0 %1867 }
 0x45e   : > { %v2095_v47 = vmul.f32 %v4548_v40, %v1949_v19  ;;  %v2077_v2 = vmul.f32 %v4484_v30, %v1868_v44 }
 0x460   : > { %v2199_v3 = vsel %vm355_vm1, %v2095_v47, 0.0  ;;  %v2147_v49 = vsel %vm355_vm1, %v2077_v2, 0.0 }
 0x461   : > { %v4729_v51 = vadd.f32 %v2200_v36, %v2199_v3  ;;  %v2148_v42 = vadd.f32 %v2147_v49, %v2146_v6  ;;  %v1837_v32 = vpop.permute.xlu1 %1836  ;;  %v1980_v27 = vpop.permute.xlu0 %1979 }
 0x462   : > { %v2070_v54 = vmul.f32 %v4480_v9, %v1837_v32  ;;  %v2102_v21 = vmul.f32 %v4488_v50, %v1980_v27  ;;  %v4999_v27 = vld [vmem:[#allocation19_spill] sm:$0xff] }
 0x464   : > { %v2128_v10 = vsel %vm355_vm1, %v2070_v54, 0.0  ;;  %v2218_v46 = vsel %vm355_vm1, %v2102_v21, 0.0 }
 0x465   : > { %v2129_v15 = vadd.f32 %v2128_v10, %v2127_v43  ;;  %v1926_v0 = vpop.permute.xlu1 %1925  ;;  %v1899_v40 = vpop.permute.xlu0 %1898 }
 0x466   : > { %v2090_v30 = vmul.f32 %v4498_v23, %v1926_v0  ;;  %v2084_v16 = vmul.f32 %v4502_v60, %v1899_v40 }
 0x468   : > { %v2183_v58 = vsel %vm355_vm1, %v2090_v30, 0.0  ;;  %v5001_v30 = vld [vmem:[#allocation18_spill] sm:$0xff] }
 0x469   : > { %v4736_v48 = vadd.f32 %v2183_v58, %v2182_v20  ;;  %v1984_v38 = vpop.permute.xlu1 %1983  ;;  %v2011_v57 = vpop.permute.xlu0 %2010  ;;  %v5002_v58 = vld [vmem:[#allocation26_spill] sm:$0xff] }
 0x46a   : > { %v2103_v26 = vmul.f32 %v4492_v56, %v1984_v38  ;;  %v2109_v60 = vmul.f32 %v4520_v22, %v2011_v57 }
 0x46c   : > { %v2219_v9 = vsel %vm355_vm1, %v2103_v26, 0.0 }
 0x46d   : > { %v4741_v34 = vadd.f32 %v2219_v9, %v2218_v46  ;;  %v1957_v43 = vpop.permute.xlu1 %1956  ;;  %v1841_v29 = vpop.permute.xlu0 %1840  ;;  %v2237_v46 = vsel %vm355_vm1, %v2109_v60, 0.0 }
 0x46e   : > { %v2071_v11 = vmul.f32 %v4506_v7, %v1841_v29  ;;  %v2097_v19 = vmul.f32 %v4578_v33, %v1957_v43  ;;  %v2166_v7 = vsel %vm355_vm1, %v2084_v16, 0.0 }
 0x471   : > { %v2015_v37 = vpop.permute.xlu1 %2014  ;;  %v1930_v23 = vpop.permute.xlu0 %1929 }
 0x472   : > { %v2110_v54 = vmul.f32 %v4999_v27, %v2015_v37 }
 0x474   : > { %v2238_v29 = vsel %vm355_vm1, %v2110_v54, 0.0 }
 0x475   : > { %v1872_v63 = vpop.permute.xlu1 %1871  ;;  %v2042_v50 = vpop.permute.xlu0 %2041 }
 0x476   : > { %v2078_v13 = vmul.f32 %v4510_v14, %v1872_v63 }
 0x478   : > { %v2149_v5 = vsel %vm355_vm1, %v2078_v13, 0.0  ;;  %v5004_v13 = vld [vmem:[#allocation31_spill] sm:$0xff] }
 0x479   : > { %v1988_v52 = vpop.permute.xlu1 %1987  ;;  %v1903_v24 = vpop.permute.xlu0 %1902  ;;  %v2150_v44 = vadd.f32 %v2149_v5, %v2148_v42  ;;  %v2202_v42 = vsel %vm355_vm1, %v2097_v19, 0.0 }
 0x47a   : > { %v2085_v2 = vmul.f32 %v4532_v39, %v1903_v24  ;;  %v2104_v21 = vmul.f32 %v5001_v30, %v1988_v52 }
 0x47c   : > { %v2168_v22 = vsel %vm355_vm1, %v2085_v2, 0.0 }
 0x47d   : > { %v2046_v31 = vpop.permute.xlu1 %2045  ;;  %v4743_v1 = vpop.permute.xlu0 %2018 }
 0x481   : > { %v1961_v28 = vpop.permute.xlu1 %1960  ;;  %v1876_v8 = vpop.permute.xlu0 %1875 }
 0x482   : > { %v2079_v6 = vmul.f32 %v4544_v61, %v1876_v8  ;;  %v2130_v61 = vsel %vm355_vm1, %v2071_v11, 0.0 }
 0x483   : > { %v2131_v32 = vadd.f32 %v2130_v61, %v2129_v15  ;;  %v2203_v15 = vadd.f32 %v2202_v42, %v4729_v51  ;;  %v5005_v51 = vld [vmem:[#allocation32_spill] sm:$0xff] }
 0x484   : > { %v2151_v17 = vsel %vm355_vm1, %v2079_v6, 0.0  ;;  %v2098_v11 = vmul.f32 %v5005_v51, %v1961_v28  ;;  %v5008_v61 = vld [vmem:[#allocation24_spill] sm:$0xff]  ;;  %v2239_v28 = vadd.f32 %v2238_v29, %v2237_v46  ;;  %v5013_v46 = vld [vmem:[#allocation41_spill] sm:$0xff] }
 0x485   : > { %v1845_v56 = vpop.permute.xlu1 %1844  ;;  %v1992_v62 = vpop.permute.xlu0 %1991  ;;  %v2152_v3 = vadd.f32 %v2151_v17, %v2150_v44  ;;  %v5007_v44 = vld [vmem:[#allocation21_spill] sm:$0xff] }
 0x486   : > { %v2072_v20 = vmul.f32 %v4536_v35, %v1845_v56  ;;  %v2204_v27 = vsel %vm355_vm1, %v2098_v11, 0.0  ;;  %v5016_v11 = vld [vmem:[#allocation30_spill] sm:$0xff] }
 0x488   : > { %v2132_v49 = vsel %vm355_vm1, %v2072_v20, 0.0  ;;  %v5006_v20 = vld [vmem:[#allocation23_spill] sm:$0xff] }
 0x489   : > { %v1934_v53 = vpop.permute.xlu1 %1933  ;;  %v1907_v18 = vpop.permute.xlu0 %1906  ;;  %v2133_v57 = vadd.f32 %v2132_v49, %v2131_v32  ;;  %v2117_v19 = vmul.f32 %v5006_v20, %v2046_v31  ;;  %v5010_v31 = vld [vmem:[#allocation37_spill] sm:$0xff] }
 0x48a   : > { %v2086_v35 = vmul.f32 %v4574_v59, %v1907_v18  ;;  %v2167_v59 = vadd.f32 %v2166_v7, %v4718_v12  ;;  %v5003_v12 = vld [vmem:[#allocation22_spill] sm:$0xff]  ;;  %v2221_v18 = vsel %vm355_vm1, %v2104_v21, 0.0  ;;  %v2092_v2 = vmul.f32 %v5008_v61, %v1934_v53  ;;  %v5009_v7 = vld [vmem:[#allocation25_spill] sm:$0xff] }
 0x48b   : > { %v2116_v56 = vmul.f32 %v5003_v12, %v2042_v50  ;;  %v2111_v50 = vmul.f32 %v5009_v7, %v4743_v1  ;;  %v2222_v53 = vadd.f32 %v2221_v18, %v4741_v34  ;;  %v4796_v1 = vsel %vm355_vm1, %v2117_v19, 0.0  ;;  %v5015_v12 = vld [vmem:[#allocation33_spill] sm:$0xff] }
 0x48c   : > { %v2170_v9 = vsel %vm355_vm1, %v2086_v35, 0.0  ;;  %v2169_v37 = vadd.f32 %v2168_v22, %v2167_v59 }
 0x48d   : > { %v4747_v45 = vpop.permute.xlu1 %2049  ;;  %v4749_v4 = vpop.permute.xlu0 %2022  ;;  %v4790_v32 = vsel %vm355_vm1, %v2116_v56, 0.0  ;;  %v2240_v30 = vsel %vm355_vm1, %v2111_v50, 0.0 }
 0x48e   : > { %v2171_v5 = vadd.f32 %v2170_v9, %v2169_v37 }
 0x491   : > { %v1965_v14 = vpop.permute.xlu1 %1964  ;;  %v1880_v47 = vpop.permute.xlu0 %1879 }
 0x492   : > { %v2080_v36 = vmul.f32 %v4586_v55, %v1880_v47  ;;  %v5000_v55 = vld [vmem:[#allocation20_spill] sm:$0xff]  ;;  %v2105_v47 = vmul.f32 %v5007_v44, %v1992_v62  ;;  %v2099_v62 = vmul.f32 %v5010_v31, %v1965_v14 }
 0x493   : > { %v2091_v40 = vmul.f32 %v5000_v55, %v1930_v23  ;;  %v2187_v55 = vsel %vm355_vm1, %v2092_v2, 0.0 }
 0x494   : > { %v2153_v33 = vsel %vm355_vm1, %v2080_v36, 0.0  ;;  %v2206_v59 = vsel %vm355_vm1, %v2099_v62, 0.0 }
 0x495   : > { %v2154_v10 = vadd.f32 %v2153_v33, %v2152_v3  ;;  %v1849_v39 = vpop.permute.xlu1 %1848  ;;  %v1996_v0 = vpop.permute.xlu0 %1995  ;;  %v2185_v8 = vsel %vm355_vm1, %v2091_v40, 0.0  ;;  %v5011_v40 = vld [vmem:[#allocation29_spill] sm:$0xff] }
 0x496   : > { %v2073_v38 = vmul.f32 %v5002_v58, %v1849_v39  ;;  %v2186_v42 = vadd.f32 %v2185_v8, %v4736_v48  ;;  %v2223_v39 = vsel %vm355_vm1, %v2105_v47, 0.0 }
 0x497   : > { %v2155_v26 = vrot.slane %v2154_v10, 4 }
 0x498   : > { %v2134_v43 = vsel %vm355_vm1, %v2073_v38, 0.0  ;;  %v2205_v38 = vadd.f32 %v2204_v27, %v2203_v15  ;;  %v2188_v29 = vadd.f32 %v2187_v55, %v2186_v42  ;;  %v2241_v27 = vadd.f32 %v2240_v30, %v2239_v28  ;;  %v5021_v55 = vld [vmem:[#allocation38_spill] sm:$0xff] }
 0x499   : > { %v2156_v23 = vadd.f32 %v2155_v26, %v2154_v10  ;;  %v2135_v63 = vadd.f32 %v2134_v43, %v2133_v57  ;;  %v1938_v52 = vpop.permute.xlu1 %1937  ;;  %v1911_v24 = vpop.permute.xlu0 %1910  ;;  %v5012_v57 = vld [vmem:[#allocation27_spill] sm:$0xff]  ;;  %v2224_v43 = vadd.f32 %v2223_v39, %v2222_v53 }
 0x49a   : > { %v2087_v6 = vmul.f32 %v5004_v13, %v1911_v24  ;;  %v2093_v48 = vmul.f32 %v5011_v40, %v1938_v52  ;;  %v2106_v26 = vmul.f32 %v5012_v57, %v1996_v0  ;;  %v2207_v15 = vadd.f32 %v2206_v59, %v2205_v38 }
 0x49b   : > { %v2157_v16 = vrot.slane %v2156_v23, 2  ;;  %v2136_v17 = vrot.slane %v2135_v63, 4 }
 0x49c   : > { %v2172_v36 = vsel %vm355_vm1, %v2087_v6, 0.0  ;;  %v2189_v24 = vsel %vm355_vm1, %v2093_v48, 0.0 }
 0x49d   : > { %v2158_v3 = vadd.f32 %v2157_v16, %v2156_v23  ;;  %v2137_v60 = vadd.f32 %v2136_v17, %v2135_v63  ;;  %v2173_v49 = vadd.f32 %v2172_v36, %v2171_v5  ;;  %v2054_v35 = vpop.permute.xlu1 %2053  ;;  %v2027_v33 = vpop.permute.xlu0 %2026  ;;  %v5014_v63 = vld [vmem:[#allocation28_spill] sm:$0xff]  ;;  %v2112_v5 = vmul.f32 %v5016_v11, %v4749_v4  ;;  %v5017_v17 = vld [vmem:[#allocation35_spill] sm:$0xff] }
 0x49e   : > { %v2118_v52 = vmul.f32 %v5014_v63, %v4747_v45  ;;  %v2225_v16 = vsel %vm355_vm1, %v2106_v26, 0.0  ;;  %v5018_v45 = vld [vmem:[#allocation44_spill] sm:$0xff]  ;;  %v2190_v47 = vadd.f32 %v2189_v24, %v2188_v29 }
 0x49f   : > { %v2138_v54 = vrot.slane %v2137_v60, 2  ;;  %v2174_v10 = vrot.slane %v2173_v49, 4  ;;  %v2159_v21 = vrot.slane %v2158_v3, 1  ;;  %v5019_v36 = vld [vmem:[#allocation36_spill] sm:$0xff]  ;;  %v2226_v4 = vadd.f32 %v2225_v16, %v2224_v43 }
 0x4a0   : > { %v2113_v7 = vmul.f32 %v5019_v36, %v2027_v33  ;;  %v5023_v29 = vld [vmem:[#allocation40_spill] sm:$0xff] }
 0x4a1   : > { %v2139_v22 = vadd.f32 %v2138_v54, %v2137_v60  ;;  %v2175_v14 = vadd.f32 %v2174_v10, %v2173_v49  ;;  %v1969_v58 = vpop.permute.xlu1 %1968  ;;  %v2000_v34 = vpop.permute.xlu0 %1999  ;;  %v2160_v18 = vadd.f32 %v2159_v21, %v2158_v3  ;;  %v2242_v54 = vsel %vm355_vm1, %v2112_v5, 0.0  ;;  %v5020_v10 = vld [vmem:[#allocation34_spill] sm:$0xff] }
 0x4a2   : > { %v2100_v9 = vmul.f32 %v5013_v46, %v1969_v58  ;;  %v2107_v56 = vmul.f32 %v5015_v12, %v2000_v34  ;;  %v2119_v39 = vmul.f32 %v5020_v10, %v2054_v35  ;;  %v2244_v58 = vsel %vm355_vm1, %v2113_v7, 0.0  ;;  %v5022_v34 = vld [vmem:[#allocation39_spill] sm:$0xff]  ;;  %v5025_v5 = vld [vmem:[#allocation42_spill] sm:$0xff] }
 0x4a3   : > { %v2140_v37 = vrot.slane %v2139_v22, 1  ;;  %v2176_v23 = vrot.slane %v2175_v14, 2  ;;  %v2243_v28 = vadd.f32 %v2242_v54, %v2241_v27 }
 0x4a4   : > { %v2208_v8 = vsel %vm355_vm1, %v2100_v9, 0.0  ;;  %v2227_v50 = vsel %vm355_vm1, %v2107_v56, 0.0  ;;  %v2258_v9 = vadd.f32 %v4796_v1, %v4790_v32  ;;  %v2261_v43 = vsel %vm355_vm1, %v2119_v39, 0.0 }
 0x4a5   : > { %v2141_v13 = vadd.f32 %v2140_v37, %v2139_v22  ;;  %v2177_v6 = vadd.f32 %v2176_v23, %v2175_v14  ;;  %v1942_v0 = vpop.permute.xlu1 %1941  ;;  %v1973_v51 = vpop.permute.xlu0 %1972  ;;  %v2209_v2 = vadd.f32 %v2208_v8, %v2207_v15  ;;  %v2228_v48 = vadd.f32 %v2227_v50, %v2226_v4  ;;  %v5024_v23 = vld [vmem:[#allocation43_spill] sm:$0xff] }
 0x4a6   : > { %v2094_v20 = vmul.f32 %v5017_v17, %v1942_v0  ;;  %v2101_v19 = vmul.f32 %v5018_v45, %v1973_v51  ;;  %v2259_v14 = vsel %vm355_vm1, %v2118_v52, 0.0  ;;  %v2245_v52 = vadd.f32 %v2244_v58, %v2243_v28 }
 0x4a7   : > { %v2298_v44 = vsel %vm1630_vm10, %v2160_v18, %v2141_v13  ;;  %v2178_v61 = vrot.slane %v2177_v6, 1  ;;  %v2260_v56 = vadd.f32 %v2259_v14, %v2258_v9 }
 0x4a8   : > { %v2191_v3 = vsel %vm355_vm1, %v2094_v20, 0.0  ;;  %v2210_v60 = vsel %vm355_vm1, %v2101_v19, 0.0 }
 0x4a9   : > { %v2179_v49 = vadd.f32 %v2178_v61, %v2177_v6  ;;  %v2192_v42 = vadd.f32 %v2191_v3, %v2190_v47  ;;  %v2211_v31 = vadd.f32 %v2210_v60, %v2209_v2  ;;  %v2058_v62 = vpop.permute.xlu1 %2057  ;;  %v2004_v53 = vpop.permute.xlu0 %2003  ;;  %v2262_v1 = vadd.f32 %v2261_v43, %v2260_v56  ;;  %v5026_v3 = vld [vmem:[#allocation45_spill] sm:$0xff] }
 0x4aa   : > { %v2108_v40 = vmul.f32 %v5021_v55, %v2004_v53  ;;  %v2120_v38 = vmul.f32 %v5022_v34, %v2058_v62 }
 0x4ab   : > { %v2299_v33 = vsel %vm1632_vm11, %v2179_v49, %v2298_v44  ;;  %v2193_v21 = vrot.slane %v2192_v42, 4  ;;  %v2212_v22 = vrot.slane %v2211_v31, 4 }
 0x4ac   : > { %v2229_v59 = vsel %vm355_vm1, %v2108_v40, 0.0  ;;  %v2263_v15 = vsel %vm355_vm1, %v2120_v38, 0.0 }
 0x4ad   : > { %v2194_v30 = vadd.f32 %v2193_v21, %v2192_v42  ;;  %v2213_v57 = vadd.f32 %v2212_v22, %v2211_v31  ;;  %v2230_v26 = vadd.f32 %v2229_v59, %v2228_v48  ;;  %v2031_v35 = vpop.permute.xlu1 %2030  ;;  %v2035_v46 = vpop.permute.xlu0 %2034  ;;  %v2264_v44 = vadd.f32 %v2263_v15, %v2262_v1 }
 0x4ae   : > { %v2114_v37 = vmul.f32 %v5023_v29, %v2031_v35  ;;  %v2115_v63 = vmul.f32 %v5024_v23, %v2035_v46  ;;  %v5027_v29 = vsub.s32 0, %v4142_v25 }
 0x4af   : > { %v2195_v24 = vrot.slane %v2194_v30, 2  ;;  %v2214_v8 = vrot.slane %v2213_v57, 2  ;;  %v2231_v12 = vrot.slane %v2230_v26, 4 }
 0x4b0   : > { %v2246_v18 = vsel %vm355_vm1, %v2114_v37, 0.0  ;;  %v2248_v11 = vsel %vm355_vm1, %v2115_v63, 0.0  ;;  %v2396_v37 = vrot.slane %v4698_v41, %v5027_v29 }
 0x4b1   : > { %v2196_v13 = vadd.f32 %v2195_v24, %v2194_v30  ;;  %v2215_v6 = vadd.f32 %v2214_v8, %v2213_v57  ;;  %v2232_v0 = vadd.f32 %v2231_v12, %v2230_v26  ;;  %v2247_v51 = vadd.f32 %v2246_v18, %v2245_v52  ;;  %v2062_v32 = vpop.permute.xlu1 %2061 }
 0x4b2   : > { %v2121_v16 = vmul.f32 %v5025_v5, %v2062_v32 }
 0x4b3   : > { %v2197_v17 = vrot.slane %v2196_v13, 1  ;;  %v2216_v20 = vrot.slane %v2215_v6, 1  ;;  %v2233_v45 = vrot.slane %v2232_v0, 2  ;;  %v2249_v19 = vadd.f32 %v2248_v11, %v2247_v51 }
 0x4b4   : > { %v2265_v47 = vsel %vm355_vm1, %v2121_v16, 0.0  ;;  %v5028_v11 = vsub.s32 2, %v4142_v25 }
 0x4b5   : > { %v2198_v61 = vadd.f32 %v2197_v17, %v2196_v13  ;;  %v2217_v2 = vadd.f32 %v2216_v20, %v2215_v6  ;;  %v2234_v36 = vadd.f32 %v2233_v45, %v2232_v0  ;;  %v2250_v7 = vrot.slane %v2249_v19, 4  ;;  %v2066_v50 = vpop.permute.xlu1 %2065 }
 0x4b6   : > { %v2122_v60 = vmul.f32 %v5026_v3, %v2066_v50  ;;  %v2266_v31 = vadd.f32 %v2265_v47, %v2264_v44  ;;  %v2435_v5 = vrot.slane %v4698_v41, %v5028_v11  ;;  %v5029_v20 = vsub.s32 3, %v4142_v25 }
 0x4b7   : > { %v2300_v4 = vsel %vm1634_vm12, %v2198_v61, %v2299_v33  ;;  %v2235_v49 = vrot.slane %v2234_v36, 1  ;;  %v2251_v42 = vadd.f32 %v2250_v7, %v2249_v19 }
 0x4b8   : > { %v2301_v62 = vsel %vm1636_vm13, %v2217_v2, %v2300_v4  ;;  %v2267_v53 = vsel %vm355_vm1, %v2122_v60, 0.0  ;;  %v2440_v45 = vrot.slane %v4698_v41, %v5029_v20  ;;  %v5030_v2 = vld [vmem:[#allocation17_spill] sm:$0xff] }
 0x4b9   : > { %v2236_v27 = vadd.f32 %v2235_v49, %v2234_v36  ;;  %v2252_v54 = vrot.slane %v2251_v42, 2  ;;  %v2268_v10 = vadd.f32 %v2267_v53, %v2266_v31 }
 0x4bb   : > { %v2253_v39 = vadd.f32 %v2252_v54, %v2251_v42  ;;  %v2269_v55 = vrot.slane %v2268_v10, 4  ;;  %v2302_v40 = vsel %vm1638_vm14, %v2236_v27, %v2301_v62 }
 0x4bc   : > { %v2404_v28 = vpop.permute.xlu0 %2403 }
 0x4bd   : > { %v2270_v48 = vadd.f32 %v2269_v55, %v2268_v10  ;;  %v2254_v21 = vrot.slane %v2253_v39, 1 }
 0x4bf   : > { %v2271_v22 = vrot.slane %v2270_v48, 2  ;;  %v2255_v58 = vadd.f32 %v2254_v21, %v2253_v39 }
 0x4c1   : > { %v2272_v14 = vadd.f32 %v2271_v22, %v2270_v48  ;;  %v2303_v38 = vsel %vm1640_vm15, %v2255_v58, %v2302_v40 }
 0x4c3   : > { %v2273_v33 = vrot.slane %v2272_v14, 1 }
 0x4c5   : > { %v2274_v34 = vadd.f32 %v2273_v33, %v2272_v14 }
 0x4c7   : > { %v2304_v59 = vsel %vm1642_vm0, %v2274_v34, %v2303_v38 }
 0x4c8   : > { %2862 = vmatmul.mubr.msk.f32.vlgmr.msra.gmra.mrb[26].mxu1 %vm355_vm1, %v2304_v59 }
 0x59b   : > { %v2863_v30 = vpop.f32.mrb[26].mxu1 }
 0x59c   : > { %v2406_v57 = vadd.f32 %v2863_v30, %v2404_v28  ;;  %v2383_v26 = vpop.f32.mrb[27].mxu1 }
 0x59d   : > { %v2397_v23 = vadd.f32 %v2396_v37, %v2383_v26 }
 0x59e   : > { %v2666_v35 = vmul.f32 -1.442695, %v2406_v57 }
 0x5a0   : > { %3116 = vpow2.f32 %v2666_v35 }
 0x5aa   : > { %v3117_v46 = vpop.eup %3116 }
 0x5ab   : > { %v2410_v9 = vadd.f32 1.0, %v3117_v46 }
 0x5ad   : > { %3118 = vrcp.f32 %v2410_v9 }
 0x5b7   : > { %v3119_v43 = vpop.eup %3118 }
 0x5b8   : > { %2414 = vrot.lane.b32.xlu1 %v3119_v43, %s3409_s26  ;;  %v2449_v8 = vmul.f32 %v3119_v43, %v3119_v43 }
 0x62a   : > { %v2415_v63 = vpop.permute.xlu1 %2414 }
 0x62b   : > { %v2417_v52 = vadd.f32 %v2415_v63, %v2397_v23 }
 0x62d   : > { %v2418_v24 = vsel %vm1118_vm3, %v2417_v52, 0.0 }
 0x62e   : > { %2419 = vadd.xlane.f32.xlu0 %v2418_v24 }
 0x644   : > { %2451 = vrot.lane.b32.xlu0 %v2449_v8, %s3409_s26 }
 0x6bb   : > { %v2420_v12 = vpop.xlane.xlu0 %2419 }
 0x6bc   : > { %v2422_v56 = vmul.f32 0.03125, %v2420_v12 }
 0x6be   : > { %v2423_v15 = vsub.f32 %v2417_v52, %v2422_v56 }
 0x6bf   : > { %v2452_v6 = vpop.permute.xlu0 %2451 }
 0x6c0   : > { %v2424_v18 = vmul.f32 %v2423_v15, %v2423_v15  ;;  %v2454_v0 = vsel %vm1118_vm3, %v2452_v6, 0.0 }
 0x6c2   : > { %v2425_v13 = vsel %vm1118_vm3, %v2424_v18, 0.0 }
 0x6c3   : > { %2426 = vadd.xlane.f32.xlu1 %v2425_v13 }
 0x6c7   : > { %2455 = vadd.xlane.f32.xlu1 %v2454_v0 }
 0x750   : > { %v2427_v51 = vpop.xlane.xlu1 %2426 }
 0x751   : > { %v2428_v32 = vmul.f32 0.03125, %v2427_v51 }
 0x753   : > { %v2429_v1 = vadd.f32 1e-05, %v2428_v32 }
 0x754   : > { %v2456_v36 = vpop.xlane.xlu1 %2455 }
 0x755   : > { %3120 = vrsqrt.f32 %v2429_v1  ;;  %v2457_v7 = vmax.f32 %v2456_v36, 1e-24 }
 0x757   : > { %3122 = vrsqrt.f32 %v2457_v7 }
 0x75f   : > { %v3121_v16 = vpop.eup %3120 }
 0x760   : > { %v2431_v17 = vmul.f32 %v3121_v16, %v2423_v15 }
 0x761   : > { %v3123_v25 = vpop.eup %3122 }
 0x762   : > { %v2436_v19 = vmul.f32 %v2435_v5, %v2431_v17  ;;  %v2459_v4 = vmul.f32 %v3123_v25, %v3119_v43 }
 0x764   : > { %v2441_v44 = vadd.f32 %v2440_v45, %v2436_v19 }
 0x766   : > { %v2442_v47 = vmul.f32 %v2441_v44, %v2441_v44 }
 0x768   : > { %v2443_v61 = vsel %vm1118_vm3, %v2442_v47, 0.0 }
 0x769   : > { %2444 = vadd.xlane.f32.xlu1 %v2443_v61 }
 0x77a   : > { %2461 = vrot.lane.b32.xlu1 %v5030_v2, %s3410_s27 }
 0x7f6   : > { %v2445_v50 = vpop.xlane.xlu1 %2444 }
 0x7f7   : > { %v2446_v3 = vmax.f32 %v2445_v50, 1e-24 }
 0x7f9   : > { %3124 = vrsqrt.f32 %v2446_v3 }
 0x7fa   : > { %v2462_v42 = vpop.permute.xlu1 %2461 }
 0x803   : > { %v3125_v41 = vpop.eup %3124 }
 0x804   : > { %v2448_v60 = vmul.f32 %v3125_v41, %v2441_v44 }
 0x806   : > { %v2464_v49 = vsel %vm1118_vm3, %v2448_v60, %v2459_v4 }
 0x807   : > { %v2465_v31 = vsel %vm355_vm1, %v2464_v49, %v2462_v42 }
 0x808   : > { %v2467_v62 = vsel %vm2466_vm5, %v2465_v31, 0.0 }
 0x809   : > { %2468 = vst [vmem:[%s297_s6] sm:$0xff] %v2467_v62 }
 0x80a   : > { %3337 = shalt.err (!%p3334_p13)
}
 0x80b   : > { %s3338_s29 = scalar_lea.hbm %s4867_s8, 128  ;;  %s3342_s26 = scalar_lea.hbm %s4916_s5, 256 }
 0x80c   : > { %p3339_p9 = scmp.ne.s32.totalorder %s4867_s8, %s3338_s29  ;;  %p3343_p6 = scmp.lt.u32.totalorder %s4867_s8, %s4916_s5 }
 0x80d   : > { %p3344_p4 = scmp.lt.u32.totalorder %s3342_s26, %s3338_s29  ;;  %p3346_p3 = scmp.lt.u32.totalorder %s3338_s29, %s4867_s8 }
 0x80e   : > { %p3340_p0 = pnand %p3339_p9, %p3607_p10 }
 0x80f   : > { %p3345_p8 = por %p3344_p4, %p3343_p6 }
 0x810   : > { %p3341_p11 = pneg %p3340_p0 }
 0x811   : > { %p3347_p5 = por %p3346_p3, %p3345_p8 }
 0x813   : > { %p3348_p7 = pnand %p3347_p5, %p3341_p11 }
 0x815   : > { %3351 = shalt.err (!%p3348_p7)
}
 0x816   : > { %2925 = dma.vmem_to_hbm [thread:$0]  (%p3607_p10), %s4869_s28, 128, %s4867_s8, %s2470_s22  }
 0x817 PF: > { %s2495_s16 = sand.u32 1, %s3386_s18   ;;  %p5031_p12 = scmp.ne.s32.totalorder %s4955_s25, 0 }
 0x818   : > { %p5032_p1 = scmp.ge.s32.totalorder %s3398_s21, 2  ;;  %s2496_s6 = scalar_lea.sflag [#allocation5], %s2495_s16 }
 0x81a   : > { %p2945_p2 = pnand %p5032_p1, %p5031_p12 }
 0x81c   : > { %3381 = dma.done.wait (!%p2945_p2), %s2496_s6, 128  }
 0x81d   : > { %3383 = vsyncadd (!%p2945_p2), %s2496_s6, 4294967168  ;;  %p20_p13 = scmp.ge.s32.totalorder %s3597_s14, 4   ;;  %s5033_s18 = smov %s3390_s19 }
 0x81e   : > { %s5034_s19 = smov %s3394_s20  ;;  %s5035_s20 = smov %s3613_s9 }
 0x81f   : > { %s5036_s21 = smov %s3597_s14  ;;  %22 = sbr.rel (!%p20_p13) target bundleno = 7 (0x7), region = 101 }
 0x826   :  { %2501 = vsyncpa [#allocation4], 1 }
 0x827   :  { %2503 = vsyncpa [#allocation4 + $0x1], 1 }
 0x828   :  { %2504 = vsyncpa [#allocation7], 1 }
 0x829   :  { %2505 = vsyncpa [#allocation10], 1 }
 0x82a   :  { %2506 = vsyncpa [#allocation5], 1 }
 0x82b   :  { %2508 = vsyncpa [#allocation5 + $0x1], 1 }

</bundles_post_ra>
